<compile_context>
chip_gen: v7x
topology: tpu7x:2x2x1
jax: 0.10.0
libtpu: 0.0.40
codegen_flags: <defaults>
</compile_context>

<pallas_src>
import numpy as np

import jax
import jax.numpy as jnp
from jax.experimental import pallas as pl
from jax.experimental.pallas import tpu as pltpu

_TWO_PI = float(2.0 * np.pi)


def _choose_tile_m(n: int, target: int = 2048) -> int:
    """Lane-dense column tile for the (2F, N) output.

    Always a multiple of 128 and <= `target`; sized so there are >= 2 grid
    steps whenever N >= 256 (v7x megacore sharding) while keeping the
    double-buffered output block at ~<= 2 MiB of VMEM on every generation.
    """
    half = (n + 1) // 2
    t = ((half + 127) // 128) * 128           # round N/2 up to a multiple of 128
    return max(128, min(target, t))


def _make_pe_kernel(h: int, w: int, f_pad: int, tile_m: int, f_chunk: int = 8):
    """Build the kernel with (h, w, f_pad, tile_m) baked in as compile-time constants."""
    w_is_pow2 = (w & (w - 1)) == 0

    def kernel(gauss_ref, out_ref):
        # gauss_ref: (f_pad, 2) f32, pre-scaled by 2*pi (col 0 = x-freqs, col 1 = y-freqs)
        # out_ref  : (2*f_pad, tile_m) -> rows [0:f_pad] = sin, [f_pad:2*f_pad] = cos
        base = pl.program_id(0) * tile_m
        idx = base + jax.lax.broadcasted_iota(jnp.int32, (1, tile_m), 1)   # flat col index
        if w_is_pow2:
            shift = int(np.log2(w))
            row = idx >> shift                                             # i
            col = idx & (w - 1)                                            # j
        else:
            row = idx // w
            col = idx - row * w
        # Normalized-to-[0,1] grid coords ((i+0.5)/h, (j+0.5)/w), mapped to [-1, 1].
        y = (row.astype(jnp.float32) + 0.5) * (2.0 / h) - 1.0              # (1, TM)
        x = (col.astype(jnp.float32) + 0.5) * (2.0 / w) - 1.0              # (1, TM)

        # K=2 contraction as VPU broadcast-FMAs (no MXU). Process F in 8-sublane
        # chunks so each proj slice stays in vregs between its sin and cos store.
        for c in range(0, f_pad, f_chunk):
            gx = gauss_ref[c:c + f_chunk, 0:1]                             # (fc, 1)
            gy = gauss_ref[c:c + f_chunk, 1:2]                             # (fc, 1)
            proj = gx * x + gy * y                                         # (fc, TM); 2*pi folded
            out_ref[c:c + f_chunk, :] = jnp.sin(proj).astype(out_ref.dtype)
            out_ref[f_pad + c:f_pad + c + f_chunk, :] = jnp.cos(proj).astype(out_ref.dtype)

    return kernel


def _pe_dense_pallas(gauss: jax.Array, h: int, w: int,
                     out_dtype=jnp.float32) -> jax.Array:
    """gauss: (2, F) f32 -> positional encoding (2F, h, w), channels-first.

    out_dtype=jnp.bfloat16 halves HBM writeback bytes if downstream tolerates
    it; default f32 matches the PyTorch module exactly.
    """
    f = gauss.shape[1]
    f_pad = ((f + 7) // 8) * 8                # keep the [f:2f] store sublane-aligned
    n = h * w
    tile_m = _choose_tile_m(n)
    grid_m = pl.cdiv(n, tile_m)

    # Fold the 2*pi factor into the tiny projection matrix; pad F if needed.
    gauss_t = jnp.transpose(gauss).astype(jnp.float32) * _TWO_PI           # (F, 2)
    if f_pad != f:
        gauss_t = jnp.pad(gauss_t, ((0, f_pad - f), (0, 0)))

    kernel = _make_pe_kernel(h, w, f_pad, tile_m)
    pe_t = pl.pallas_call(
        kernel,
        out_shape=jax.ShapeDtypeStruct((2 * f_pad, n), out_dtype),
        grid_spec=pltpu.PrefetchScalarGridSpec(
            num_scalar_prefetch=0,
            grid=(grid_m,),
            in_specs=[pl.BlockSpec((f_pad, 2), lambda i: (0, 0))],
            out_specs=pl.BlockSpec((2 * f_pad, tile_m), lambda i: (0, i)),
        ),
        compiler_params=pltpu.CompilerParams(
            dimension_semantics=("parallel",),
        ),
    )(gauss_t)

    if f_pad != f:
        pe_t = jnp.concatenate([pe_t[:f], pe_t[f_pad:f_pad + f]], axis=0)
    # Free reshape: channels-first (2F, h, w) — matches pe.permute(2, 0, 1).
    return pe_t.reshape(2 * f, h, w)


class PositionEmbeddingRandomPallas:
    """JAX/Pallas port of SAM's PositionEmbeddingRandom."""

    def __init__(self, num_pos_feats: int = 64, scale: float = None, key=None):
        if scale is None or scale <= 0.0:
            scale = 1.0
        if key is None:
            key = jax.random.PRNGKey(0)
        # buffer: positional_encoding_gaussian_matrix, shape (2, num_pos_feats)
        self.gauss = scale * jax.random.normal(key, (2, num_pos_feats), dtype=jnp.float32)
        self.num_pos_feats = num_pos_feats

    def forward(self, size):
        """Dense positional encoding for an (h, w) grid -> (2*num_pos_feats, h, w)."""
        h, w = size
        return _pe_dense_pallas(self.gauss, h, w)

    # --- plain-JAX helpers for sparse (point/box) prompts: a handful of points,
    #     not worth a Pallas kernel. ---
    def _pe_encoding(self, coords):
        coords = 2.0 * coords - 1.0
        coords = coords @ self.gauss
        coords = _TWO_PI * coords
        return jnp.concatenate([jnp.sin(coords), jnp.cos(coords)], axis=-1)

    def forward_with_coords(self, coords_input, image_size):
        coords = coords_input.astype(jnp.float32)
        coords = coords.at[..., 0].set(coords[..., 0] / image_size[1])
        coords = coords.at[..., 1].set(coords[..., 1] / image_size[0])
        return self._pe_encoding(coords)


class PromptEncoderPallas:
    """Minimal JAX port of SAM's PromptEncoder built on the Pallas PE kernel."""

    def __init__(self, image_embedding_size, input_image_size, mask_in_chans,
                 embed_dim, key=None):
        if key is None:
            key = jax.random.PRNGKey(0)
        keys = jax.random.split(key, 7)
        self.embed_dim = embed_dim
        self.image_embedding_size = image_embedding_size
        self.input_image_size = input_image_size
        self.pe_layer = PositionEmbeddingRandomPallas(embed_dim // 2, key=keys[0])
        self.point_embeddings = [
            jax.random.normal(keys[1 + i], (1, embed_dim), dtype=jnp.float32)
            for i in range(4)
        ]
        self.not_a_point_embed = jax.random.normal(keys[5], (1, embed_dim), dtype=jnp.float32)
        self.no_mask_embed = jax.random.normal(keys[6], (1, embed_dim), dtype=jnp.float32)
        # TODO(synk): mask_downscaling (Conv2d + LayerNorm2d + GELU stack) is not
        # implemented here; it would be plain JAX/XLA convs layered on top.

    def get_dense_pe(self):
        h, w = self.image_embedding_size
        return self.pe_layer.forward((h, w))[None]          # (1, embed_dim, h, w)

    def _embed_points(self, points, labels, pad):
        points = points + 0.5
        if pad:
            padding_point = jnp.zeros((points.shape[0], 1, 2), jnp.float32)
            padding_label = -jnp.ones((labels.shape[0], 1), dtype=labels.dtype)
            points = jnp.concatenate([points, padding_point], axis=1)
            labels = jnp.concatenate([labels, padding_label], axis=1)
        pe = self.pe_layer.forward_with_coords(points, self.input_image_size)
        lab = labels[..., None]
        pe = jnp.where(lab == -1, 0.0, pe)
        pe = pe + jnp.where(lab == -1, self.not_a_point_embed, 0.0)
        pe = pe + jnp.where(lab == 0, self.point_embeddings[0], 0.0)
        pe = pe + jnp.where(lab == 1, self.point_embeddings[1], 0.0)
        return pe

    def _embed_boxes(self, boxes):
        boxes = boxes + 0.5
        coords = boxes.reshape(-1, 2, 2)
        corner = self.pe_layer.forward_with_coords(coords, self.input_image_size)
        corner = corner.at[:, 0, :].add(self.point_embeddings[2][0])
        corner = corner.at[:, 1, :].add(self.point_embeddings[3][0])
        return corner

    def _get_batch_size(self, points, boxes, masks):
        if points is not None:
            return points[0].shape[0]
        if boxes is not None:
            return boxes.shape[0]
        if masks is not None:
            return masks.shape[0]
        return 1

    def forward(self, points=None, boxes=None, masks=None):
        bs = self._get_batch_size(points, boxes, masks)
        sparse_list = []
        if points is not None:
            coords, labels = points
            sparse_list.append(self._embed_points(coords, labels, pad=boxes is None))
        if boxes is not None:
            sparse_list.append(self._embed_boxes(boxes))
        if sparse_list:
            sparse = jnp.concatenate(sparse_list, axis=1)
        else:
            sparse = jnp.zeros((bs, 0, self.embed_dim), jnp.float32)
        if masks is not None:
            # TODO(synk): mask_downscaling not implemented (conv stack).
            raise NotImplementedError("mask_downscaling is not implemented")
        h, w = self.image_embedding_size
        dense = jnp.broadcast_to(self.no_mask_embed.reshape(1, -1, 1, 1),
                                 (bs, self.embed_dim, h, w))
        return sparse, dense


def _reference_forward(gauss: jax.Array, size) -> jax.Array:
    """Pure-JAX reference mirroring the PyTorch module, for correctness check."""
    h, w = size
    grid = jnp.ones((h, w), dtype=jnp.float32)
    y_embed = (jnp.cumsum(grid, axis=0) - 0.5) / h
    x_embed = (jnp.cumsum(grid, axis=1) - 0.5) / w
    coords = jnp.stack([x_embed, y_embed], axis=-1)
    coords = 2 * coords - 1
    coords = coords @ gauss
    coords = _TWO_PI * coords
    pe = jnp.concatenate([jnp.sin(coords), jnp.cos(coords)], axis=-1)
    return jnp.transpose(pe, (2, 0, 1))


if __name__ == "__main__":
    key = jax.random.PRNGKey(0)
    num_pos_feats = 64
    module = PositionEmbeddingRandomPallas(num_pos_feats=num_pos_feats, scale=1.0, key=key)

    # Case 1: power-of-two grid (16x16) -> shift/mask indexing, 2 grid steps.
    h, w = 16, 16
    out = jax.block_until_ready(module.forward((h, w)))
    assert out.shape == (2 * num_pos_feats, h, w), out.shape
    assert out.dtype == jnp.float32
    ref = jax.block_until_ready(_reference_forward(module.gauss, (h, w)))
    np.testing.assert_allclose(np.asarray(out), np.asarray(ref), rtol=1e-5, atol=3e-5)

    # Case 2: awkward N = 240 (not a multiple of 128) -> cdiv grid with a masked
    # partial last block (no full-extent fallback), integer-divide indexing path.
    h2, w2 = 12, 20
    out2 = jax.block_until_ready(module.forward((h2, w2)))
    assert out2.shape == (2 * num_pos_feats, h2, w2), out2.shape
    ref2 = jax.block_until_ready(_reference_forward(module.gauss, (h2, w2)))
    np.testing.assert_allclose(np.asarray(out2), np.asarray(ref2), rtol=1e-5, atol=3e-5)

    # Case 3: PromptEncoder wrapper — get_dense_pe + point prompts (plain JAX sparse path).
    enc = PromptEncoderPallas(image_embedding_size=(16, 16), input_image_size=(256, 256),
                              mask_in_chans=16, embed_dim=32, key=jax.random.PRNGKey(0))
    dpe = jax.block_until_ready(enc.get_dense_pe())
    assert dpe.shape == (1, 32, 16, 16), dpe.shape
    ref3 = jax.block_until_ready(_reference_forward(enc.pe_layer.gauss, (16, 16)))
    np.testing.assert_allclose(np.asarray(dpe[0]), np.asarray(ref3), rtol=1e-5, atol=3e-5)

    pts = jax.random.uniform(jax.random.PRNGKey(1), (2, 3, 2), minval=0.0, maxval=256.0)
    lbls = jnp.array([[1, 0, -1], [1, 1, 0]], dtype=jnp.int32)
    sparse, dense = enc.forward(points=(pts, lbls), boxes=None, masks=None)
    jax.block_until_ready((sparse, dense))
    assert sparse.shape == (2, 4, 32), sparse.shape      # 3 points + 1 padding point
    assert dense.shape == (2, 32, 16, 16), dense.shape

    print("KERNEL_OK")
</pallas_src>

<mosaic_0001>
module attributes {stable_mosaic.version = 11 : i64} {
  func.func @kernel(%arg0: i32, %arg1: memref<64x2xf32, #tpu.memory_space<vmem>>, %arg2: memref<128x128xf32, #tpu.memory_space<vmem>>) attributes {dimension_semantics = [#tpu.dimension_semantics<parallel>], iteration_bounds = array<i64: 2>, scalar_prefetch = 0 : i64, scratch_operands = 0 : i64, tpu.core_type = #tpu.core_type<tc>, window_params = [{pipeline_mode = #tpu.pipeline_mode<synchronous>, transform_indices = @transform_0, window_bounds = array<i64: 64, 2>}, {transform_indices = @transform_1, window_bounds = array<i64: 128, 128>}]} {
    %c128_i32 = arith.constant 128 : i32
    %0 = arith.muli %arg0, %c128_i32 : i32
    %1 = tpu.iota {dimensions = array<i32: 1>} : vector<1x128xi32>
    %2 = vector.broadcast %0 : i32 to vector<1x128xi32>
    %3 = arith.addi %2, %1 : vector<1x128xi32>
    %c4_i32 = arith.constant 4 : i32
    %4 = vector.broadcast %c4_i32 : i32 to vector<1x128xi32>
    %5 = arith.shrsi %3, %4 : vector<1x128xi32>
    %c15_i32 = arith.constant 15 : i32
    %6 = vector.broadcast %c15_i32 : i32 to vector<1x128xi32>
    %7 = arith.andi %3, %6 : vector<1x128xi32>
    %8 = arith.sitofp %5 : vector<1x128xi32> to vector<1x128xf32>
    %cst = arith.constant 5.000000e-01 : f32
    %9 = vector.broadcast %cst : f32 to vector<1x128xf32>
    %10 = arith.addf %8, %9 : vector<1x128xf32>
    %cst_0 = arith.constant 1.250000e-01 : f32
    %11 = vector.broadcast %cst_0 : f32 to vector<1x128xf32>
    %12 = arith.mulf %10, %11 : vector<1x128xf32>
    %cst_1 = arith.constant 1.000000e+00 : f32
    %13 = vector.broadcast %cst_1 : f32 to vector<1x128xf32>
    %14 = arith.subf %12, %13 : vector<1x128xf32>
    %15 = arith.sitofp %7 : vector<1x128xi32> to vector<1x128xf32>
    %cst_2 = arith.constant 5.000000e-01 : f32
    %16 = vector.broadcast %cst_2 : f32 to vector<1x128xf32>
    %17 = arith.addf %15, %16 : vector<1x128xf32>
    %cst_3 = arith.constant 1.250000e-01 : f32
    %18 = vector.broadcast %cst_3 : f32 to vector<1x128xf32>
    %19 = arith.mulf %17, %18 : vector<1x128xf32>
    %cst_4 = arith.constant 1.000000e+00 : f32
    %20 = vector.broadcast %cst_4 : f32 to vector<1x128xf32>
    %21 = arith.subf %19, %20 : vector<1x128xf32>
    %c0 = arith.constant 0 : index
    %c0_5 = arith.constant 0 : index
    %22 = vector.load %arg1[%c0, %c0_5] : memref<64x2xf32, #tpu.memory_space<vmem>>, vector<8x1xf32>
    %c0_6 = arith.constant 0 : index
    %c1 = arith.constant 1 : index
    %23 = vector.load %arg1[%c0_6, %c1] : memref<64x2xf32, #tpu.memory_space<vmem>>, vector<8x1xf32>
    %24 = vector.broadcast %22 : vector<8x1xf32> to vector<8x128xf32>
    %25 = vector.broadcast %21 : vector<1x128xf32> to vector<8x128xf32>
    %26 = arith.mulf %24, %25 : vector<8x128xf32>
    %27 = vector.broadcast %23 : vector<8x1xf32> to vector<8x128xf32>
    %28 = vector.broadcast %14 : vector<1x128xf32> to vector<8x128xf32>
    %29 = arith.mulf %27, %28 : vector<8x128xf32>
    %30 = arith.addf %26, %29 : vector<8x128xf32>
    %31 = math.sin %30 : vector<8x128xf32>
    %c0_7 = arith.constant 0 : index
    %c0_8 = arith.constant 0 : index
    %32 = vector.load %arg2[%c0_7, %c0_8] : memref<128x128xf32, #tpu.memory_space<vmem>>, vector<8x128xf32>
    tpu.vector_store %arg2[%c0_7, %c0_8], %31 {strides = array<i32>} : memref<128x128xf32, #tpu.memory_space<vmem>>, vector<8x128xf32>,
    %33 = math.cos %30 : vector<8x128xf32>
    %c64 = arith.constant 64 : index
    %c0_9 = arith.constant 0 : index
    %34 = vector.load %arg2[%c64, %c0_9] : memref<128x128xf32, #tpu.memory_space<vmem>>, vector<8x128xf32>
    tpu.vector_store %arg2[%c64, %c0_9], %33 {strides = array<i32>} : memref<128x128xf32, #tpu.memory_space<vmem>>, vector<8x128xf32>,
    %c8 = arith.constant 8 : index
    %c0_10 = arith.constant 0 : index
    %35 = vector.load %arg1[%c8, %c0_10] : memref<64x2xf32, #tpu.memory_space<vmem>>, vector<8x1xf32>
    %c8_11 = arith.constant 8 : index
    %c1_12 = arith.constant 1 : index
    %36 = vector.load %arg1[%c8_11, %c1_12] : memref<64x2xf32, #tpu.memory_space<vmem>>, vector<8x1xf32>
    %37 = vector.broadcast %35 : vector<8x1xf32> to vector<8x128xf32>
    %38 = vector.broadcast %21 : vector<1x128xf32> to vector<8x128xf32>
    %39 = arith.mulf %37, %38 : vector<8x128xf32>
    %40 = vector.broadcast %36 : vector<8x1xf32> to vector<8x128xf32>
    %41 = vector.broadcast %14 : vector<1x128xf32> to vector<8x128xf32>
    %42 = arith.mulf %40, %41 : vector<8x128xf32>
    %43 = arith.addf %39, %42 : vector<8x128xf32>
    %44 = math.sin %43 : vector<8x128xf32>
    %c8_13 = arith.constant 8 : index
    %c0_14 = arith.constant 0 : index
    %45 = vector.load %arg2[%c8_13, %c0_14] : memref<128x128xf32, #tpu.memory_space<vmem>>, vector<8x128xf32>
    tpu.vector_store %arg2[%c8_13, %c0_14], %44 {strides = array<i32>} : memref<128x128xf32, #tpu.memory_space<vmem>>, vector<8x128xf32>,
    %46 = math.cos %43 : vector<8x128xf32>
    %c72 = arith.constant 72 : index
    %c0_15 = arith.constant 0 : index
    %47 = vector.load %arg2[%c72, %c0_15] : memref<128x128xf32, #tpu.memory_space<vmem>>, vector<8x128xf32>
    tpu.vector_store %arg2[%c72, %c0_15], %46 {strides = array<i32>} : memref<128x128xf32, #tpu.memory_space<vmem>>, vector<8x128xf32>,
    %c16 = arith.constant 16 : index
    %c0_16 = arith.constant 0 : index
    %48 = vector.load %arg1[%c16, %c0_16] : memref<64x2xf32, #tpu.memory_space<vmem>>, vector<8x1xf32>
    %c16_17 = arith.constant 16 : index
    %c1_18 = arith.constant 1 : index
    %49 = vector.load %arg1[%c16_17, %c1_18] : memref<64x2xf32, #tpu.memory_space<vmem>>, vector<8x1xf32>
    %50 = vector.broadcast %48 : vector<8x1xf32> to vector<8x128xf32>
    %51 = vector.broadcast %21 : vector<1x128xf32> to vector<8x128xf32>
    %52 = arith.mulf %50, %51 : vector<8x128xf32>
    %53 = vector.broadcast %49 : vector<8x1xf32> to vector<8x128xf32>
    %54 = vector.broadcast %14 : vector<1x128xf32> to vector<8x128xf32>
    %55 = arith.mulf %53, %54 : vector<8x128xf32>
    %56 = arith.addf %52, %55 : vector<8x128xf32>
    %57 = math.sin %56 : vector<8x128xf32>
    %c16_19 = arith.constant 16 : index
    %c0_20 = arith.constant 0 : index
    %58 = vector.load %arg2[%c16_19, %c0_20] : memref<128x128xf32, #tpu.memory_space<vmem>>, vector<8x128xf32>
    tpu.vector_store %arg2[%c16_19, %c0_20], %57 {strides = array<i32>} : memref<128x128xf32, #tpu.memory_space<vmem>>, vector<8x128xf32>,
    %59 = math.cos %56 : vector<8x128xf32>
    %c80 = arith.constant 80 : index
    %c0_21 = arith.constant 0 : index
    %60 = vector.load %arg2[%c80, %c0_21] : memref<128x128xf32, #tpu.memory_space<vmem>>, vector<8x128xf32>
    tpu.vector_store %arg2[%c80, %c0_21], %59 {strides = array<i32>} : memref<128x128xf32, #tpu.memory_space<vmem>>, vector<8x128xf32>,
    %c24 = arith.constant 24 : index
    %c0_22 = arith.constant 0 : index
    %61 = vector.load %arg1[%c24, %c0_22] : memref<64x2xf32, #tpu.memory_space<vmem>>, vector<8x1xf32>
    %c24_23 = arith.constant 24 : index
    %c1_24 = arith.constant 1 : index
    %62 = vector.load %arg1[%c24_23, %c1_24] : memref<64x2xf32, #tpu.memory_space<vmem>>, vector<8x1xf32>
    %63 = vector.broadcast %61 : vector<8x1xf32> to vector<8x128xf32>
    %64 = vector.broadcast %21 : vector<1x128xf32> to vector<8x128xf32>
    %65 = arith.mulf %63, %64 : vector<8x128xf32>
    %66 = vector.broadcast %62 : vector<8x1xf32> to vector<8x128xf32>
    %67 = vector.broadcast %14 : vector<1x128xf32> to vector<8x128xf32>
    %68 = arith.mulf %66, %67 : vector<8x128xf32>
    %69 = arith.addf %65, %68 : vector<8x128xf32>
    %70 = math.sin %69 : vector<8x128xf32>
    %c24_25 = arith.constant 24 : index
    %c0_26 = arith.constant 0 : index
    %71 = vector.load %arg2[%c24_25, %c0_26] : memref<128x128xf32, #tpu.memory_space<vmem>>, vector<8x128xf32>
    tpu.vector_store %arg2[%c24_25, %c0_26], %70 {strides = array<i32>} : memref<128x128xf32, #tpu.memory_space<vmem>>, vector<8x128xf32>,
    %72 = math.cos %69 : vector<8x128xf32>
    %c88 = arith.constant 88 : index
    %c0_27 = arith.constant 0 : index
    %73 = vector.load %arg2[%c88, %c0_27] : memref<128x128xf32, #tpu.memory_space<vmem>>, vector<8x128xf32>
    tpu.vector_store %arg2[%c88, %c0_27], %72 {strides = array<i32>} : memref<128x128xf32, #tpu.memory_space<vmem>>, vector<8x128xf32>,
    %c32 = arith.constant 32 : index
    %c0_28 = arith.constant 0 : index
    %74 = vector.load %arg1[%c32, %c0_28] : memref<64x2xf32, #tpu.memory_space<vmem>>, vector<8x1xf32>
    %c32_29 = arith.constant 32 : index
    %c1_30 = arith.constant 1 : index
    %75 = vector.load %arg1[%c32_29, %c1_30] : memref<64x2xf32, #tpu.memory_space<vmem>>, vector<8x1xf32>
    %76 = vector.broadcast %74 : vector<8x1xf32> to vector<8x128xf32>
    %77 = vector.broadcast %21 : vector<1x128xf32> to vector<8x128xf32>
    %78 = arith.mulf %76, %77 : vector<8x128xf32>
    %79 = vector.broadcast %75 : vector<8x1xf32> to vector<8x128xf32>
    %80 = vector.broadcast %14 : vector<1x128xf32> to vector<8x128xf32>
    %81 = arith.mulf %79, %80 : vector<8x128xf32>
    %82 = arith.addf %78, %81 : vector<8x128xf32>
    %83 = math.sin %82 : vector<8x128xf32>
    %c32_31 = arith.constant 32 : index
    %c0_32 = arith.constant 0 : index
    %84 = vector.load %arg2[%c32_31, %c0_32] : memref<128x128xf32, #tpu.memory_space<vmem>>, vector<8x128xf32>
    tpu.vector_store %arg2[%c32_31, %c0_32], %83 {strides = array<i32>} : memref<128x128xf32, #tpu.memory_space<vmem>>, vector<8x128xf32>,
    %85 = math.cos %82 : vector<8x128xf32>
    %c96 = arith.constant 96 : index
    %c0_33 = arith.constant 0 : index
    %86 = vector.load %arg2[%c96, %c0_33] : memref<128x128xf32, #tpu.memory_space<vmem>>, vector<8x128xf32>
    tpu.vector_store %arg2[%c96, %c0_33], %85 {strides = array<i32>} : memref<128x128xf32, #tpu.memory_space<vmem>>, vector<8x128xf32>,
    %c40 = arith.constant 40 : index
    %c0_34 = arith.constant 0 : index
    %87 = vector.load %arg1[%c40, %c0_34] : memref<64x2xf32, #tpu.memory_space<vmem>>, vector<8x1xf32>
    %c40_35 = arith.constant 40 : index
    %c1_36 = arith.constant 1 : index
    %88 = vector.load %arg1[%c40_35, %c1_36] : memref<64x2xf32, #tpu.memory_space<vmem>>, vector<8x1xf32>
    %89 = vector.broadcast %87 : vector<8x1xf32> to vector<8x128xf32>
    %90 = vector.broadcast %21 : vector<1x128xf32> to vector<8x128xf32>
    %91 = arith.mulf %89, %90 : vector<8x128xf32>
    %92 = vector.broadcast %88 : vector<8x1xf32> to vector<8x128xf32>
    %93 = vector.broadcast %14 : vector<1x128xf32> to vector<8x128xf32>
    %94 = arith.mulf %92, %93 : vector<8x128xf32>
    %95 = arith.addf %91, %94 : vector<8x128xf32>
    %96 = math.sin %95 : vector<8x128xf32>
    %c40_37 = arith.constant 40 : index
    %c0_38 = arith.constant 0 : index
    %97 = vector.load %arg2[%c40_37, %c0_38] : memref<128x128xf32, #tpu.memory_space<vmem>>, vector<8x128xf32>
    tpu.vector_store %arg2[%c40_37, %c0_38], %96 {strides = array<i32>} : memref<128x128xf32, #tpu.memory_space<vmem>>, vector<8x128xf32>,
    %98 = math.cos %95 : vector<8x128xf32>
    %c104 = arith.constant 104 : index
    %c0_39 = arith.constant 0 : index
    %99 = vector.load %arg2[%c104, %c0_39] : memref<128x128xf32, #tpu.memory_space<vmem>>, vector<8x128xf32>
    tpu.vector_store %arg2[%c104, %c0_39], %98 {strides = array<i32>} : memref<128x128xf32, #tpu.memory_space<vmem>>, vector<8x128xf32>,
    %c48 = arith.constant 48 : index
    %c0_40 = arith.constant 0 : index
    %100 = vector.load %arg1[%c48, %c0_40] : memref<64x2xf32, #tpu.memory_space<vmem>>, vector<8x1xf32>
    %c48_41 = arith.constant 48 : index
    %c1_42 = arith.constant 1 : index
    %101 = vector.load %arg1[%c48_41, %c1_42] : memref<64x2xf32, #tpu.memory_space<vmem>>, vector<8x1xf32>
    %102 = vector.broadcast %100 : vector<8x1xf32> to vector<8x128xf32>
    %103 = vector.broadcast %21 : vector<1x128xf32> to vector<8x128xf32>
    %104 = arith.mulf %102, %103 : vector<8x128xf32>
    %105 = vector.broadcast %101 : vector<8x1xf32> to vector<8x128xf32>
    %106 = vector.broadcast %14 : vector<1x128xf32> to vector<8x128xf32>
    %107 = arith.mulf %105, %106 : vector<8x128xf32>
    %108 = arith.addf %104, %107 : vector<8x128xf32>
    %109 = math.sin %108 : vector<8x128xf32>
    %c48_43 = arith.constant 48 : index
    %c0_44 = arith.constant 0 : index
    %110 = vector.load %arg2[%c48_43, %c0_44] : memref<128x128xf32, #tpu.memory_space<vmem>>, vector<8x128xf32>
    tpu.vector_store %arg2[%c48_43, %c0_44], %109 {strides = array<i32>} : memref<128x128xf32, #tpu.memory_space<vmem>>, vector<8x128xf32>,
    %111 = math.cos %108 : vector<8x128xf32>
    %c112 = arith.constant 112 : index
    %c0_45 = arith.constant 0 : index
    %112 = vector.load %arg2[%c112, %c0_45] : memref<128x128xf32, #tpu.memory_space<vmem>>, vector<8x128xf32>
    tpu.vector_store %arg2[%c112, %c0_45], %111 {strides = array<i32>} : memref<128x128xf32, #tpu.memory_space<vmem>>, vector<8x128xf32>,
    %c56 = arith.constant 56 : index
    %c0_46 = arith.constant 0 : index
    %113 = vector.load %arg1[%c56, %c0_46] : memref<64x2xf32, #tpu.memory_space<vmem>>, vector<8x1xf32>
    %c56_47 = arith.constant 56 : index
    %c1_48 = arith.constant 1 : index
    %114 = vector.load %arg1[%c56_47, %c1_48] : memref<64x2xf32, #tpu.memory_space<vmem>>, vector<8x1xf32>
    %115 = vector.broadcast %113 : vector<8x1xf32> to vector<8x128xf32>
    %116 = vector.broadcast %21 : vector<1x128xf32> to vector<8x128xf32>
    %117 = arith.mulf %115, %116 : vector<8x128xf32>
    %118 = vector.broadcast %114 : vector<8x1xf32> to vector<8x128xf32>
    %119 = vector.broadcast %14 : vector<1x128xf32> to vector<8x128xf32>
    %120 = arith.mulf %118, %119 : vector<8x128xf32>
    %121 = arith.addf %117, %120 : vector<8x128xf32>
    %122 = math.sin %121 : vector<8x128xf32>
    %c56_49 = arith.constant 56 : index
    %c0_50 = arith.constant 0 : index
    %123 = vector.load %arg2[%c56_49, %c0_50] : memref<128x128xf32, #tpu.memory_space<vmem>>, vector<8x128xf32>
    tpu.vector_store %arg2[%c56_49, %c0_50], %122 {strides = array<i32>} : memref<128x128xf32, #tpu.memory_space<vmem>>, vector<8x128xf32>,
    %124 = math.cos %121 : vector<8x128xf32>
    %c120 = arith.constant 120 : index
    %c0_51 = arith.constant 0 : index
    %125 = vector.load %arg2[%c120, %c0_51] : memref<128x128xf32, #tpu.memory_space<vmem>>, vector<8x128xf32>
    tpu.vector_store %arg2[%c120, %c0_51], %124 {strides = array<i32>} : memref<128x128xf32, #tpu.memory_space<vmem>>, vector<8x128xf32>,
    return
  }
  func.func @transform_0(%arg0: i32) -> (i32, i32) {
    %c0_i32 = arith.constant 0 : i32
    %c0_i32_0 = arith.constant 0 : i32
    %c0_i32_1 = arith.constant 0 : i32
    return %c0_i32, %c0_i32_0 : i32, i32
  }
  func.func @transform_1(%arg0: i32) -> (i32, i32) {
    %c0_i32 = arith.constant 0 : i32
    %c0_i32_0 = arith.constant 0 : i32
    return %c0_i32, %arg0 : i32, i32
  }
}

</mosaic_0001>

<bundles_post_ra>
// kernel: tpu_custom_call.1
= control target key start
LH: loop header
LB: loop body
LE: loop exit
PB: predicated region body
PF: predicated region fallthrough
CT: control target
= control target key end

     0   :  { %6 = vsyncpa [#allocation3], 0  ;;  %s3148_s0 = inlined_call_operand.vmem [shape: f32[64,2], index: 0, kind: input, shape index: {}]   ;;  %s3149_s1 = inlined_call_operand.hbm [shape: f32[128,256], index: 1, kind: output, shape index: {}]  }
   0x1   :  { %8 = vsyncpa [#allocation3 + $0x1], 0  ;;  %s2229_s6 = smov 0   ;;  %s2231_s7 = smov 0  }
   0x2   :  { %s2233_s8 = smov 0   ;;  %s2235_s9 = smov 0  }
   0x3 LB: > { %s1948_s10 = sadd.s32 4294967295, %s2205_s9   ;;  %s1949_s11 = sadd.s32 4294967294, %s2205_s9   ;;  %s2205_s9 = sphi %s2235_s9, %s3167_s9   ;;  %s2201_s8 = sphi %s2233_s8, %s3166_s8   ;;  %s2197_s7 = sphi %s2231_s7, %s3165_s7   ;;  %s2193_s6 = sphi %s2229_s6, %s3164_s6  }
   0x4   : > { %s2252_s12 = sadd.s32 1, %s2205_s9   ;;  %s42_s13 = sadd.s32 1, %s2201_s8 }
   0x5   : > { %s39_s14 = ssub.s32 %s2205_s9, %s2252_s12  ;;  %p52_p0 = scmp.ne.s32.totalorder %s2201_s8, %s2197_s7 }
   0x6   : > { %p40_p1 = scmp.eq.s32.totalorder %s39_s14, 0  ;;  %p53_p2 = scmp.eq.s32.totalorder %s1948_s10, 1 }
   0x7   : > { %p58_p3 = scmp.ne.s32.totalorder %s2197_s7, %s2193_s6  ;;  %p59_p4 = scmp.eq.s32.totalorder %s1949_s11, 1 }
   0x8   : > { %s2264_s15 = scalar_select %p40_p1, %s2201_s8, %s42_s13  }
   0x9   : > { %p2266_p5 = por %p53_p2, %p52_p0  ;;  %p2270_p6 = por %p59_p4, %p58_p3 }
   0xa   : > { %p1951_p7 = scmp.ge.s32.totalorder %s2205_s9, 1  ;;  %p80_p8 = scmp.lt.s32.totalorder %s2205_s9, 3 }
   0xc   : > { %p81_p9 = pnand %p1951_p7, %p80_p8 }
   0xd   : > { %v332_v0 = vld [vmem:[%s3148_s0 + $0x8] sm:$0xff] (!%p81_p9)  ;;  %v110_v1 = vld [vmem:[%s3148_s0] sm:$0xff] (!%p81_p9)  ;;  %v2207_v2 = vmov (!%p81_p9), 0   ;;  %v2208_v3 = vmov (!%p81_p9), 1   ;;  %v554_v4 = vld [vmem:[%s3148_s0 + $0x10] sm:$0xff] (!%p81_p9)  ;;  %v96_v10 = vlaneseq (!%p81_p9)  ;;  %s2302_s5 = sshll.u32 (!%p81_p9), %s1948_s10, 7 }
   0xe   : > { %84 = sbr.rel (%p81_p9) target bundleno = 418 (0x1a2), region = 24  ;;  %2108 = vset.pattern.permute.xlu1 (!%p81_p9), %v2207_v2  ;;  %2106 = vset.pattern.permute.xlu0 (!%p81_p9), %v2207_v2  ;;  %v776_v5 = vld [vmem:[%s3148_s0 + $0x18] sm:$0xff] (!%p81_p9)  ;;  %v998_v6 = vld [vmem:[%s3148_s0 + $0x20] sm:$0xff] (!%p81_p9)  ;;  %v1220_v7 = vld [vmem:[%s3148_s0 + $0x28] sm:$0xff] (!%p81_p9)  ;;  %v98_v12 = vstv (!%p81_p9), %s2302_s5  ;;  %v2209_v62 = vmov (!%p81_p9), 683565275   ;;  %s3098_s20 = scalar_lea.hbm (!%p81_p9), %s3149_s1, %s2302_s5 }
   0xf   : > { %335 = vperm.xlu1 (!%p81_p9), %2108, %v332_v0   ;;  %113 = vperm.xlu0 (!%p81_p9), %2106, %v110_v1   ;;  %v1442_v8 = vld [vmem:[%s3148_s0 + $0x30] sm:$0xff] (!%p81_p9)  ;;  %v1664_v9 = vld [vmem:[%s3148_s0 + $0x38] sm:$0xff] (!%p81_p9)  ;;  %v97_v11 = vand.u32 (!%p81_p9), 127, %v96_v10  ;;  %s92_s10 = sand.u32 (!%p81_p9), 1, %s2197_s7   ;;  %s2215_s23 = smov (!%p81_p9), [#allocation2]  }
  0x10   : > { %s2575_s11 = sshll.u32 (!%p81_p9), %s92_s10, 7  ;;  %s3107_s21 = scalar_lea.sflag (!%p81_p9), [#allocation3], %s92_s10 }
  0x11   : > { %v99_v13 = vadd.s32 (!%p81_p9), %v98_v12, %v97_v11  ;;  %s2615_s13 = scalar_lea.vmem (!%p81_p9), [#allocation2], %s2575_s11  ;;  %s2147_s24 = sshll.u32 (!%p81_p9), %s2215_s23, 4  ;;  %s2148_s24 = int_to_ptr.vmem [resolvable:$false] %s2147_s24 }
  0x12   : > { %s1899_s14 = sshll.u32 (!%p81_p9), %s2615_s13, 4  ;;  %s2149_s25 = scalar_lea.vmem (!%p81_p9), %s2148_s24, 4096  ;;  %s3100_s14 = int_to_ptr.vmem [resolvable:$true] %s1899_s14 }
  0x13   : > { %2109 = vset.pattern.permute.xlu1 (!%p81_p9), %v2208_v3  ;;  %2107 = vset.pattern.permute.xlu0 (!%p81_p9), %v2208_v3  ;;  %v101_v14 = vand.u32 (!%p81_p9), 15, %v99_v13  ;;  %v100_v15 = vshra.s32 (!%p81_p9), %v99_v13, 4  ;;  %s2143_s22 = scalar_lea.vmem (!%p81_p9), %s3100_s14, 2048  ;;  %p2150_p13 = scmp.lt.s32.totalorder (!%p81_p9), %s3100_s14, %s2148_s24 }
  0x14   : > { %340 = vperm.xlu1 (!%p81_p9), %2109, %v332_v0   ;;  %118 = vperm.xlu0 (!%p81_p9), %2107, %v110_v1   ;;  %p2144_p10 = scmp.ne.s32.totalorder (!%p81_p9), %s3100_s14, %s2143_s22  ;;  %p2151_p0 = scmp.lt.s32.totalorder (!%p81_p9), %s2149_s25, %s2143_s22 }
  0x15   : > { %v106_v16 = vcvt.s32.f32 %v101_v14  ;;  %v102_v17 = vcvt.s32.f32 %v100_v15  ;;  %v2214_v15 = vmov 1326507024  }
  0x16   : > { %p2145_p11 = pnand %p2144_p10, %p2266_p5  ;;  %p2152_p1 = por %p2151_p0, %p2150_p13 }
  0x17   : > { %v107_v18 = vadd.f32 0.5, %v106_v16  ;;  %v103_v19 = vadd.f32 0.5, %v102_v17 }
  0x18   : > { %2110 = vset.pattern.permute.xlu1 %v2207_v2  ;;  %562 = vperm.xlu0 %2107, %v554_v4   ;;  %v2210_v2 = vmov 2475754826   ;;  %p2146_p12 = pneg %p2145_p11 }
  0x19   : > { %557 = vperm.xlu1 %2110, %v554_v4   ;;  %v108_v20 = vmul.f32 0.125, %v107_v18  ;;  %v104_v21 = vmul.f32 0.125, %v103_v19  ;;  %v2211_v4 = vmov 2131351028  }
  0x1a   : > { %p2153_p2 = pnand %p2152_p1, %p2146_p12 }
  0x1b   : > { %v2305_v24 = vadd.f32 -1.0, %v108_v20  ;;  %v2307_v25 = vadd.f32 -1.0, %v104_v21 }
  0x1c   : > { %784 = vperm.xlu0 %2107, %v776_v5  }
  0x1d   : > { %779 = vperm.xlu1 %2110, %v776_v5  }
  0x20   : > { %1006 = vperm.xlu0 %2107, %v998_v6  }
  0x21   : > { %1001 = vperm.xlu1 %2110, %v998_v6   ;;  %v2212_v6 = vmov 2102212464  }
  0x24   : > { %1228 = vperm.xlu0 %2107, %v1220_v7  }
  0x25   : > { %1223 = vperm.xlu1 %2110, %v1220_v7  }
  0x28   : > { %1450 = vperm.xlu0 %2107, %v1442_v8  }
  0x29   : > { %1445 = vperm.xlu1 %2110, %v1442_v8   ;;  %v2213_v8 = vmov 920167782  }
  0x2c   : > { %1672 = vperm.xlu0 %2107, %v1664_v9  }
  0x2d   : > { %1667 = vperm.xlu1 %2110, %v1664_v9  }
  0x8e   : > { %v336_v22 = vpop.permute.xlu1 %335  ;;  %v114_v23 = vpop.permute.xlu0 %113 }
  0x8f   : > { %v338_v28 = vmul.f32 %v2305_v24, %v336_v22  ;;  %v116_v29 = vmul.f32 %v2305_v24, %v114_v23 }
  0x93   : > { %v341_v26 = vpop.permute.xlu1 %340  ;;  %v119_v27 = vpop.permute.xlu0 %118 }
  0x94   : > { %v343_v30 = vmul.f32 %v2307_v25, %v341_v26  ;;  %v121_v31 = vmul.f32 %v2307_v25, %v119_v27 }
  0x96   : > { %v2313_v32 = vadd.f32 %v343_v30, %v338_v28  ;;  %v2315_v33 = vadd.f32 %v121_v31, %v116_v29 }
  0x97   : > { %v563_v34 = vpop.permute.xlu0 %562 }
  0x98   : > { %v345_v35 = vand.u32 2147483647, %v2313_v32  ;;  %v348_v36 = vand.u32 2139095040, %v2313_v32  ;;  %v558_v37 = vpop.permute.xlu1 %557  ;;  %v123_v38 = vand.u32 2147483647, %v2315_v33  ;;  %v126_v39 = vand.u32 2139095040, %v2315_v33 }
  0x99   : > { %v565_v41 = vmul.f32 %v2307_v25, %v563_v34  ;;  %v560_v45 = vmul.f32 %v2305_v24, %v558_v37  ;;  %vm347_vm13 = vcmp.lt.s32.totalorder %v2313_v32, 0 }
  0x9a   : > { %v349_v40 = vshrl.u32 %v348_v36, 23  ;;  %v352_v42 = vand.u32 8388607, %v345_v35  ;;  %v127_v43 = vshrl.u32 %v126_v39, 23  ;;  %v130_v44 = vand.u32 8388607, %v123_v38 }
  0x9b   : > { %v2327_v48 = vadd.f32 %v565_v41, %v560_v45  ;;  %vm2416_vm14 = vcmp.le.f32.partialorder %v345_v35, 0.7853982 }
  0x9c   : > { %v1964_v46 = vadd.s32 4294967169, %v349_v40  ;;  %v1956_v47 = vadd.s32 4294967169, %v127_v43  ;;  %v353_v50 = vor.u32 8388608, %v352_v42  ;;  %v131_v51 = vor.u32 8388608, %v130_v44 }
  0x9d   : > { %v570_v53 = vand.u32 2139095040, %v2327_v48 }
  0x9e   : > { %v355_v49 = vadd.s32 1, %v1964_v46  ;;  %v133_v52 = vadd.s32 1, %v1956_v47  ;;  %v2330_v58 = vshll.u32 %v353_v50, 8  ;;  %v2332_v59 = vshll.u32 %v131_v51, 8 }
  0x9f   : > { %v2334_v60 = vshrl.u32 %v570_v53, 23 }
  0xa0   : > { %vm356_vm0 = vcmp.gt.s32.totalorder %v355_v49, 0  ;;  %vm134_vm1 = vcmp.gt.s32.totalorder %v133_v52, 0 }
  0xa1   : > { %v357_v54 = vsel %vm356_vm0, %v355_v49, 0  ;;  %v135_v57 = vsel %vm134_vm1, %v133_v52, 0  ;;  %vm125_vm0 = vcmp.lt.s32.totalorder %v2315_v33, 0 }
  0xa2   : > { %v358_v55 = vshrl.u32 %v357_v54, 5  ;;  %v359_v56 = vand.u32 31, %v357_v54  ;;  %v2337_v0 = vshrl.u32 %v135_v57, 5  ;;  %v137_v1 = vand.u32 31, %v135_v57 }
  0xa4   : > { %v360_v61 = vsub.s32 32, %v359_v56  ;;  %v362_v63 = vshll.u32 %v2209_v62, %v359_v56  ;;  %v365_v3 = vshll.u32 %v2210_v2, %v359_v56  ;;  %v368_v5 = vshll.u32 %v2211_v4, %v359_v56 }
  0xa5   : > { %v371_v7 = vshll.u32 %v2212_v6, %v359_v56  ;;  %v374_v9 = vshll.u32 %v2213_v8, %v359_v56  ;;  %vm377_vm2 = vcmp.lt.s32.totalorder %v358_v55, 1  ;;  %vm378_vm3 = vcmp.lt.s32.totalorder %v358_v55, 2 }
  0xa6   : > { %v363_v10 = vshrl.u32 %v2210_v2, %v360_v61  ;;  %v366_v11 = vshrl.u32 %v2211_v4, %v360_v61  ;;  %v369_v12 = vshrl.u32 %v2212_v6, %v360_v61  ;;  %v361_v13 = vshrl.u32 %v2209_v62, %v360_v61 }
  0xa7   : > { %v372_v14 = vshrl.u32 %v2213_v8, %v360_v61  ;;  %v375_v16 = vshrl.u32 %v2214_v15, %v360_v61  ;;  %v138_v20 = vsub.s32 32, %v137_v1  ;;  %vm379_vm4 = vcmp.lt.s32.totalorder %v358_v55, 3 }
  0xa8   : > { %v364_v17 = vor.u32 %v363_v10, %v362_v63  ;;  %v367_v18 = vor.u32 %v366_v11, %v365_v3  ;;  %v370_v19 = vor.u32 %v369_v12, %v368_v5  ;;  %vm380_vm5 = vcmp.lt.s32.totalorder %v358_v55, 4 }
  0xa9   : > { %v373_v21 = vor.u32 %v372_v14, %v371_v7  ;;  %v376_v22 = vor.u32 %v375_v16, %v374_v9  ;;  %v140_v34 = vshll.u32 %v2209_v62, %v137_v1  ;;  %v141_v39 = vshrl.u32 %v2210_v2, %v138_v20 }
  0xaa   : > { %v381_v23 = vsel %vm377_vm2, %v361_v13, %v364_v17  ;;  %v382_v26 = vsel %vm380_vm5, %v370_v19, 2102212464  ;;  %v385_v27 = vsel %vm377_vm2, %v364_v17, %v367_v18  ;;  %v389_v28 = vsel %vm377_vm2, %v367_v18, %v370_v19 }
  0xab   : > { %v383_v29 = vsel %vm379_vm4, %v367_v18, %v382_v26  ;;  %v386_v30 = vsel %vm380_vm5, %v373_v21, 920167782  ;;  %v390_v31 = vsel %vm380_vm5, %v376_v22, 1326507024  ;;  %v143_v40 = vshll.u32 %v2210_v2, %v137_v1  ;;  %v785_v22 = vpop.permute.xlu0 %784 }
  0xac   : > { %v387_v36 = vsel %vm379_vm4, %v370_v19, %v386_v30  ;;  %v391_v37 = vsel %vm379_vm4, %v373_v21, %v390_v31  ;;  %v384_v41 = vsel %vm378_vm3, %v381_v23, %v383_v29  ;;  %v144_v44 = vshrl.u32 %v2211_v4, %v138_v20  ;;  %v780_v23 = vpop.permute.xlu1 %779 }
  0xad   : > { %v388_v42 = vsel %vm378_vm3, %v385_v27, %v387_v36  ;;  %v392_v43 = vsel %vm378_vm3, %v389_v28, %v391_v37  ;;  %v142_v50 = vor.u32 %v141_v39, %v140_v34  ;;  %v146_v52 = vshll.u32 %v2211_v4, %v137_v1 }
  0xae   : > { %v2360_v45 = vmul.u32.u64.low %v2330_v58, %v392_v43  ;;  %v2361_v46 = vmul.u32.u64.high %v2330_v58, %v392_v43, %v2360_v45  ;;  %v2364_v47 = vmul.u32.u64.low %v2330_v58, %v388_v42  ;;  %v2365_v49 = vmul.u32.u64.high %v2330_v58, %v388_v42, %v2364_v47 }
  0xaf   : > { %v145_v51 = vor.u32 %v144_v44, %v143_v40  ;;  %v147_v53 = vshrl.u32 %v2212_v6, %v138_v20  ;;  %v139_v54 = vshrl.u32 %v2209_v62, %v138_v20  ;;  %v149_v55 = vshll.u32 %v2212_v6, %v137_v1 }
  0xb0   : > { %v150_v56 = vshrl.u32 %v2213_v8, %v138_v20  ;;  %v153_v57 = vshrl.u32 %v2214_v15, %v138_v20  ;;  %v400_v61 = vmul.u32 %v2330_v58, %v384_v41  ;;  %v152_v3 = vshll.u32 %v2213_v8, %v137_v1 }
  0xb1   : > { %v148_v63 = vor.u32 %v147_v53, %v146_v52  ;;  %vm155_vm6 = vcmp.lt.s32.totalorder %v2337_v0, 1  ;;  %vm402_vm7 = vc.u32 %v2361_v46, %v2364_v47  ;;  %v403_v5 = vadd.s32 1, %v2365_v49 }
  0xb2   : > { %v151_v7 = vor.u32 %v150_v56, %v149_v55  ;;  %vm156_vm8 = vcmp.lt.s32.totalorder %v2337_v0, 2  ;;  %v154_v9 = vor.u32 %v153_v57, %v152_v3  ;;  %vm157_vm9 = vcmp.lt.s32.totalorder %v2337_v0, 3 }
  0xb3   : > { %vm158_vm10 = vcmp.lt.s32.totalorder %v2337_v0, 4  ;;  %v163_v10 = vsel %vm155_vm6, %v142_v50, %v145_v51  ;;  %v404_v58 = vsel %vm402_vm7, %v403_v5, %v2365_v49  ;;  %v167_v12 = vsel %vm155_vm6, %v145_v51, %v148_v63 }
  0xb4   : > { %v160_v11 = vsel %vm158_vm10, %v148_v63, 2102212464  ;;  %v164_v1 = vsel %vm158_vm10, %v151_v7, 920167782  ;;  %v405_v13 = vadd.s32 %v404_v58, %v400_v61  ;;  %v159_v14 = vsel %vm155_vm6, %v139_v54, %v142_v50 }
  0xb5   : > { %v165_v16 = vsel %vm157_vm9, %v148_v63, %v164_v1  ;;  %v168_v17 = vsel %vm158_vm10, %v154_v9, 1326507024  ;;  %v161_v18 = vsel %vm157_vm9, %v145_v51, %v160_v11  ;;  %v1972_v21 = vadd.s32 4294967169, %v2334_v60 }
  0xb6   : > { %v166_v19 = vsel %vm156_vm8, %v163_v10, %v165_v16  ;;  %v169_v20 = vsel %vm157_vm9, %v151_v7, %v168_v17  ;;  %v406_v26 = vadd.s32 536870912, %v405_v13  ;;  %v567_v34 = vand.u32 2147483647, %v2327_v48 }
  0xb7   : > { %v170_v27 = vsel %vm156_vm8, %v167_v12, %v169_v20  ;;  %v2390_v28 = vmul.u32.u64.low %v2332_v59, %v166_v19  ;;  %v2391_v29 = vmul.u32.u64.high %v2332_v59, %v166_v19, %v2390_v28  ;;  %v577_v36 = vadd.s32 1, %v1972_v21 }
  0xb8   : > { %v2394_v30 = vmul.u32.u64.low %v2332_v59, %v170_v27  ;;  %v2395_v31 = vmul.u32.u64.high %v2332_v59, %v170_v27, %v2394_v30  ;;  %v407_v37 = vshrl.u32 %v406_v26, 30  ;;  %v162_v60 = vsel %vm156_vm8, %v159_v14, %v161_v18 }
  0xb9   : > { %v787_v39 = vmul.f32 %v2307_v25, %v785_v22  ;;  %v782_v40 = vmul.f32 %v2305_v24, %v780_v23  ;;  %vm578_vm11 = vcmp.gt.s32.totalorder %v577_v36, 0  ;;  %v181_v42 = vadd.s32 1, %v2391_v29 }
  0xba   : > { %v408_v41 = vshll.u32 %v407_v37, 30  ;;  %v579_v43 = vsel %vm578_vm11, %v577_v36, 0  ;;  %v431_v44 = vsub.s32 4, %v407_v37  ;;  %v178_v45 = vmul.u32 %v2332_v59, %v162_v60 }
  0xbb   : > { %vm180_vm12 = vc.u32 %v2395_v31, %v2390_v28  ;;  %v574_v49 = vand.u32 8388607, %v567_v34  ;;  %v581_v51 = vand.u32 31, %v579_v43  ;;  %v2408_v52 = vadd.f32 %v787_v39, %v782_v40 }
  0xbc   : > { %v409_v50 = vsub.s32 %v405_v13, %v408_v41  ;;  %v182_v0 = vsel %vm180_vm12, %v181_v42, %v2391_v29  ;;  %v432_v55 = vsel %vm347_vm13, %v431_v44, %v407_v37  ;;  %v401_v7 = vadd.s32 %v2364_v47, %v2361_v46 }
  0xbd   : > { %v183_v53 = vadd.s32 %v182_v0, %v178_v45  ;;  %v575_v59 = vor.u32 8388608, %v574_v49  ;;  %v582_v61 = vsub.s32 32, %v581_v51  ;;  %v792_v63 = vand.u32 2139095040, %v2408_v52 }
  0xbe   : > { %v411_v54 = vsub.s32 0, %v409_v50  ;;  %v2426_v10 = vsel %vm2416_vm14, 0, %v432_v55  ;;  %v789_v58 = vand.u32 2147483647, %v2408_v52  ;;  %v2430_v11 = vadd.s32 %v2390_v28, %v2395_v31 }
  0xbf   : > { %v184_v56 = vadd.s32 536870912, %v183_v53  ;;  %v2433_v1 = vshrl.u32 %v579_v43, 5  ;;  %v2435_v12 = vshll.u32 %v575_v59, 8  ;;  %v584_v14 = vshll.u32 %v2209_v62, %v581_v51 }
  0xc0   : > { %v1965_v57 = vmin.u32 %v411_v54, %v409_v50  ;;  %v585_v46 = vshrl.u32 %v2210_v2, %v582_v61  ;;  %v2439_v47 = vshrl.u32 %v792_v63, 23  ;;  %v2442_v16 = vadd.s32 3, %v2426_v10 }
  0xc1   : > { %v2420_v5 = vshrl.u32 %v184_v56, 30  ;;  %v588_v18 = vshrl.u32 %v2211_v4, %v582_v61  ;;  %v591_v19 = vshrl.u32 %v2212_v6, %v582_v61  ;;  %v583_v20 = vshrl.u32 %v2209_v62, %v582_v61 }
  0xc2   : > { %v413_v9 = vclz %v1965_v57  ;;  %v587_v21 = vshll.u32 %v2210_v2, %v581_v51  ;;  %v594_v22 = vshrl.u32 %v2213_v8, %v582_v61  ;;  %v590_v27 = vshll.u32 %v2211_v4, %v581_v51 }
  0xc3   : > { %v186_v35 = vshll.u32 %v2420_v5, 30  ;;  %v597_v28 = vshrl.u32 %v2214_v15, %v582_v61  ;;  %v586_v31 = vor.u32 %v585_v46, %v584_v14  ;;  %v593_v36 = vshll.u32 %v2212_v6, %v581_v51 }
  0xc4   : > { %v1966_v13 = vadd.s32 4294967294, %v413_v9  ;;  %v589_v60 = vor.u32 %v588_v18, %v587_v21  ;;  %v592_v39 = vor.u32 %v591_v19, %v590_v27  ;;  %v596_v40 = vshll.u32 %v2213_v8, %v581_v51 }
  0xc5   : > { %v2444_v17 = vsub.s32 %v183_v53, %v186_v35  ;;  %v595_v44 = vor.u32 %v594_v22, %v593_v36  ;;  %v209_v49 = vsub.s32 4, %v2420_v5  ;;  %vm599_vm1 = vcmp.lt.s32.totalorder %v2433_v1, 1 }
  0xc6   : > { %vm1967_vm15 = vcmp.lt.s32.totalorder %v1966_v13, 0  ;;  %v598_v0 = vor.u32 %v597_v28, %v596_v40  ;;  %vm600_vm2 = vcmp.lt.s32.totalorder %v2433_v1, 2  ;;  %vm602_vm3 = vcmp.lt.s32.totalorder %v2433_v1, 4 }
  0xc7   : > { %v416_v23 = vsel %vm1967_vm15, 0, %v1966_v13  ;;  %v189_v26 = vsub.s32 0, %v2444_v17  ;;  %vm601_vm4 = vcmp.lt.s32.totalorder %v2433_v1, 3  ;;  %v607_v51 = vsel %vm599_vm1, %v586_v31, %v589_v60 }
  0xc8   : > { %v417_v29 = vsub.s32 32, %v416_v23  ;;  %v421_v30 = vsub.s32 4294967266, %v416_v23  ;;  %v418_v41 = vshll.u32 %v409_v50, %v416_v23  ;;  %v604_v50 = vsel %vm602_vm3, %v592_v39, 2102212464 }
  0xc9   : > { %v1957_v37 = vmin.u32 %v189_v26, %v2444_v17  ;;  %vm2469_vm5 = vcmp.le.f32.partialorder %v123_v38, 0.7853982  ;;  %v603_v61 = vsel %vm599_vm1, %v583_v20, %v586_v31  ;;  %v608_v63 = vsel %vm602_vm3, %v595_v44, 920167782 }
  0xca   : > { %v419_v42 = vshrl.u32 %v401_v7, %v417_v29  ;;  %v422_v43 = vadd.s32 127, %v421_v30  ;;  %v605_v7 = vsel %vm601_vm4, %v589_v60, %v604_v50  ;;  %v609_v9 = vsel %vm601_vm4, %v592_v39, %v608_v63 }
  0xcb   : > { %v191_v45 = vclz %v1957_v37  ;;  %v611_v35 = vsel %vm599_vm1, %v589_v60, %v592_v39  ;;  %v610_v14 = vsel %vm600_vm2, %v607_v51, %v609_v9  ;;  %v612_v46 = vsel %vm602_vm3, %v598_v0, 1326507024  ;;  %v1002_v0 = vpop.permute.xlu1 %1001 }
  0xcc   : > { %v420_v53 = vor.u32 %v419_v42, %v418_v41  ;;  %v423_v54 = vshll.u32 %v422_v43, 23  ;;  %v613_v21 = vsel %vm601_vm4, %v595_v44, %v612_v46  ;;  %v210_v36 = vsel %vm125_vm0, %v209_v49, %v2420_v5 }
  0xcd   : > { %v1958_v55 = vadd.s32 4294967294, %v191_v45  ;;  %v614_v23 = vsel %vm600_vm2, %v611_v35, %v613_v21  ;;  %v2493_v26 = vmul.u32.u64.low %v2435_v12, %v610_v14  ;;  %v2494_v27 = vmul.u32.u64.high %v2435_v12, %v610_v14, %v2493_v26 }
  0xce   : > { %v424_v56 = vor.u32 4788187, %v423_v54  ;;  %v427_v59 = vcvt.s32.f32 %v420_v53  ;;  %v2499_v30 = vmul.u32.u64.low %v2435_v12, %v614_v23  ;;  %v2500_v31 = vmul.u32.u64.high %v2435_v12, %v614_v23, %v2499_v30 }
  0xcf   : > { %vm1959_vm6 = vcmp.lt.s32.totalorder %v1958_v55, 0  ;;  %v606_v37 = vsel %vm600_vm2, %v603_v61, %v605_v7  ;;  %v1980_v60 = vadd.s32 4294967169, %v2439_v47  ;;  %v2509_v39 = vand.u32 3, %v2426_v10 }
  0xd0   : > { %v425_v38 = vand.u32 2147483647, %v424_v56  ;;  %v194_v13 = vsel %vm1959_vm6, 0, %v1958_v55  ;;  %v796_v41 = vand.u32 8388607, %v789_v58  ;;  %v2516_v43 = vand.u32 3, %v2442_v16  ;;  %v1007_v16 = vpop.permute.xlu0 %1006 }
  0xd1   : > { %v195_v18 = vsub.s32 32, %v194_v13  ;;  %v196_v19 = vshll.u32 %v2444_v17, %v194_v13  ;;  %v199_v20 = vsub.s32 4294967266, %v194_v13  ;;  %v625_v5 = vadd.s32 1, %v2494_v27 }
  0xd2   : > { %v428_v22 = vmul.f32 %v427_v59, %v425_v38  ;;  %v799_v1 = vadd.s32 1, %v1980_v60  ;;  %v212_v44 = vsel %vm2469_vm5, 0, %v210_v36  ;;  %v622_v45 = vmul.u32 %v2435_v12, %v606_v37 }
  0xd3   : > { %v197_v28 = vshrl.u32 %v2430_v11, %v195_v18  ;;  %v200_v29 = vadd.s32 127, %v199_v20  ;;  %vm624_vm7 = vc.u32 %v2500_v31, %v2493_v26  ;;  %v216_v55 = vadd.s32 3, %v212_v44 }
  0xd4   : > { %v429_v17 = vxor.u32 2147483648, %v428_v22  ;;  %vm800_vm8 = vcmp.gt.s32.totalorder %v799_v1, 0  ;;  %v626_v54 = vsel %vm624_vm7, %v625_v5, %v2494_v27  ;;  %v797_v59 = vor.u32 8388608, %v796_v41 }
  0xd5   : > { %v198_v40 = vor.u32 %v197_v28, %v196_v19  ;;  %v201_v11 = vshll.u32 %v200_v29, 23  ;;  %v801_v3 = vsel %vm800_vm8, %v799_v1, 0  ;;  %v627_v50 = vadd.s32 %v626_v54, %v622_v45 }
  0xd6   : > { %v430_v42 = vsel %vm347_vm13, %v429_v17, %v428_v22  ;;  %v803_v51 = vand.u32 31, %v801_v3  ;;  %v1009_v12 = vmul.f32 %v2307_v25, %v1007_v16  ;;  %v1004_v61 = vmul.f32 %v2305_v24, %v1002_v0 }
  0xd7   : > { %v433_v47 = vsel %vm2416_vm14, %v2313_v32, %v430_v42  ;;  %v202_v10 = vor.u32 4788187, %v201_v11  ;;  %v205_v49 = vcvt.s32.f32 %v198_v40  ;;  %v628_v63 = vadd.s32 536870912, %v627_v50 }
  0xd8   : > { %2111 = vcosq.f32 %v433_v47  ;;  %v2530_v7 = vsub.s32 32, %v803_v51  ;;  %vm441_vm9 = vcmp.eq.s32.totalorder %v2516_v43, 0  ;;  %vm545_vm10 = vcmp.eq.s32.totalorder %v2509_v39, 0 }
  0xd9   : > { %2113 = vsinq.f32 %v433_v47  ;;  %v203_v53 = vand.u32 2147483647, %v202_v10  ;;  %vm548_vm11 = vcmp.eq.s32.totalorder %v2509_v39, 2  ;;  %vm569_vm12 = vcmp.lt.s32.totalorder %v2327_v48, 0 }
  0xda   : > { %vm440_vm13 = vcmp.lt.s32.totalorder %v2516_v43, 2  ;;  %vm444_vm14 = vcmp.eq.s32.totalorder %v2516_v43, 2  ;;  %vm544_vm15 = vcmp.lt.s32.totalorder %v2509_v39, 2  ;;  %v2539_v35 = vand.u32 3, %v216_v55 }
  0xdb   : > { %v206_v56 = vmul.f32 %v205_v49, %v203_v53  ;;  %v2541_v38 = vand.u32 3, %v212_v44  ;;  %v629_v13 = vshrl.u32 %v628_v63, 30  ;;  %vm437_vm1 = vweird.f32 %v2313_v32 }
  0xdc   : > { %v2546_v46 = vshrl.u32 %v801_v3, 5  ;;  %v2548_v18 = vshll.u32 %v797_v59, 8  ;;  %v2550_v19 = vadd.f32 %v1009_v12, %v1004_v61  ;;  %vm2558_vm2 = vcmp.le.f32.partialorder %v567_v34, 0.7853982 }
  0xdd   : > { %v207_v9 = vxor.u32 2147483648, %v206_v56  ;;  %v630_v22 = vshll.u32 %v629_v13, 30  ;;  %v806_v23 = vshll.u32 %v2209_v62, %v803_v51  ;;  %v807_v27 = vshrl.u32 %v2210_v2, %v2530_v7 }
  0xde   : > { %v809_v28 = vshll.u32 %v2210_v2, %v803_v51  ;;  %v810_v57 = vshrl.u32 %v2211_v4, %v2530_v7  ;;  %v816_v29 = vshrl.u32 %v2213_v8, %v2530_v7  ;;  %v653_v17 = vsub.s32 4, %v629_v13 }
  0xdf   : > { %v208_v14 = vsel %vm125_vm0, %v207_v9, %v206_v56  ;;  %v2570_v34 = vsub.s32 %v627_v50, %v630_v22  ;;  %v812_v36 = vshll.u32 %v2211_v4, %v803_v51  ;;  %v813_v40 = vshrl.u32 %v2212_v6, %v2530_v7 }
  0xe0   : > { %v211_v20 = vsel %vm2469_vm5, %v2315_v33, %v208_v14  ;;  %v815_v11 = vshll.u32 %v2212_v6, %v803_v51  ;;  %v819_v41 = vshrl.u32 %v2214_v15, %v2530_v7  ;;  %v808_v1 = vor.u32 %v807_v27, %v806_v23 }
  0xe1   : > { %2115 = vcosq.f32 %v211_v20  ;;  %v633_v5 = vsub.s32 0, %v2570_v34  ;;  %v818_v47 = vshll.u32 %v2213_v8, %v803_v51  ;;  %vm222_vm0 = vcmp.eq.s32.totalorder %v2539_v35, 2 }
  0xe2   : > { %v2112_v30 = vpop.eup %2111  ;;  %2117 = vsinq.f32 %v211_v20  ;;  %vm326_vm3 = vcmp.eq.s32.totalorder %v2541_v38, 2  ;;  %v2590_v45 = vor.u32 %v810_v57, %v809_v28  ;;  %v817_v49 = vor.u32 %v816_v29, %v815_v11 }
  0xe3   : > { %v2114_v37 = vpop.eup %2113  ;;  %v445_v60 = vxor.u32 2147483648, %v2112_v30  ;;  %vm219_vm4 = vcmp.eq.s32.totalorder %v2539_v35, 0  ;;  %vm323_vm5 = vcmp.eq.s32.totalorder %v2541_v38, 0  ;;  %v1973_v53 = vmin.u32 %v633_v5, %v2570_v34 }
  0xe4   : > { %v442_v42 = vxor.u32 2147483648, %v2114_v37  ;;  %v654_v54 = vsel %vm569_vm12, %v653_v17, %v629_v13  ;;  %vm218_vm6 = vcmp.lt.s32.totalorder %v2539_v35, 2  ;;  %vm322_vm7 = vcmp.lt.s32.totalorder %v2541_v38, 2 }
  0xe5   : > { %v446_v10 = vsel %vm444_vm14, %v445_v60, %v2114_v37  ;;  %v550_v44 = vsel %vm548_vm11, %v445_v60, %v2114_v37  ;;  %v814_v50 = vor.u32 %v813_v40, %v812_v36  ;;  %v820_v51 = vor.u32 %v819_v41, %v818_v47 }
  0xe6   : > { %v443_v16 = vsel %vm441_vm9, %v2112_v30, %v442_v42  ;;  %v547_v0 = vsel %vm545_vm10, %v2112_v30, %v442_v42  ;;  %vm215_vm8 = vweird.f32 %v2315_v33  ;;  %v623_v43 = vadd.s32 %v2493_v26, %v2500_v31 }
  0xe7   : > { %v447_v3 = vsel %vm440_vm13, %v443_v16, %v446_v10  ;;  %v551_v55 = vsel %vm544_vm15, %v547_v0, %v550_v44  ;;  %v635_v12 = vclz %v1973_v53  ;;  %v2621_v39 = vsel %vm2558_vm2, 0, %v654_v54  ;;  %v1229_v0 = vpop.permute.xlu0 %1228  ;;  %v1224_v53 = vpop.permute.xlu1 %1223 }
  0xe8   : > { %v448_v56 = vsel %vm437_vm1, nan, %v447_v3  ;;  %v552_v59 = vsel %vm437_vm1, nan, %v551_v55  ;;  %v805_v32 = vshrl.u32 %v2209_v62, %v2530_v7  ;;  %vm824_vm9 = vcmp.lt.s32.totalorder %v2546_v46, 4 }
  0xe9   : > { %449 = vst [vmem:[%s2615_s13 + $0x8] sm:$0xff] %v448_v56  ;;  %553 = vst [vmem:[%s2615_s13 + $0x48] sm:$0xff] %v552_v59  ;;  %v1014_v61 = vand.u32 2139095040, %v2550_v19  ;;  %v1974_v63 = vadd.s32 4294967294, %v635_v12  ;;  %vm821_vm10 = vcmp.lt.s32.totalorder %v2546_v46, 1  ;;  %vm823_vm11 = vcmp.lt.s32.totalorder %v2546_v46, 3 }
  0xea   : > { %v830_v26 = vsel %vm824_vm9, %v817_v49, 920167782  ;;  %vm822_vm13 = vcmp.lt.s32.totalorder %v2546_v46, 2  ;;  %v829_v9 = vsel %vm821_vm10, %v808_v1, %v2590_v45  ;;  %v834_v13 = vsel %vm824_vm9, %v820_v51, 1326507024 }
  0xeb   : > { %v2116_v31 = vpop.eup %2115  ;;  %v831_v7 = vsel %vm823_vm11, %v814_v50, %v830_v26  ;;  %vm1975_vm14 = vcmp.lt.s32.totalorder %v1974_v63, 0  ;;  %v825_v22 = vsel %vm821_vm10, %v805_v32, %v808_v1  ;;  %v833_v23 = vsel %vm821_vm10, %v2590_v45, %v814_v50 }
  0xec   : > { %v2118_v14 = vpop.eup %2117  ;;  %v223_v20 = vxor.u32 2147483648, %v2116_v31  ;;  %v638_v28 = vsel %vm1975_vm14, 0, %v1974_v63  ;;  %v826_v57 = vsel %vm824_vm9, %v814_v50, 2102212464  ;;  %v835_v29 = vsel %vm823_vm11, %v817_v49, %v834_v13 }
  0xed   : > { %v220_v27 = vxor.u32 2147483648, %v2118_v14  ;;  %v639_v36 = vsub.s32 32, %v638_v28  ;;  %v832_v37 = vsel %vm822_vm13, %v829_v9, %v831_v7  ;;  %v643_v11 = vsub.s32 4294967266, %v638_v28 }
  0xee   : > { %v224_v30 = vsel %vm222_vm0, %v223_v20, %v2118_v14  ;;  %v328_v17 = vsel %vm326_vm3, %v223_v20, %v2118_v14  ;;  %v836_v41 = vsel %vm822_vm13, %v833_v23, %v835_v29  ;;  %v640_v1 = vshll.u32 %v2570_v34, %v638_v28 }
  0xef   : > { %v221_v60 = vsel %vm219_vm4, %v2116_v31, %v220_v27  ;;  %v325_v40 = vsel %vm323_vm5, %v2116_v31, %v220_v27  ;;  %v641_v47 = vshrl.u32 %v623_v43, %v639_v36  ;;  %v644_v49 = vadd.s32 127, %v643_v11 }
  0xf0   : > { %v225_v42 = vsel %vm218_vm6, %v221_v60, %v224_v30  ;;  %v329_v5 = vsel %vm322_vm7, %v325_v40, %v328_v17  ;;  %v1015_v16 = vshrl.u32 %v1014_v61, 23  ;;  %v827_v38 = vsel %vm823_vm11, %v2590_v45, %v826_v57 }
  0xf1   : > { %v226_v10 = vsel %vm215_vm8, nan, %v225_v42  ;;  %v330_v44 = vsel %vm215_vm8, nan, %v329_v5  ;;  %v642_v35 = vor.u32 %v641_v47, %v640_v1  ;;  %v645_v3 = vshll.u32 %v644_v49, 23 }
  0xf2   : > { %227 = vst [vmem:[%s2615_s13] sm:$0xff] %v226_v10  ;;  %331 = vst [vmem:[%s2615_s13 + $0x40] sm:$0xff] %v330_v44  ;;  %v2669_v34 = vmul.u32.u64.low %v2548_v18, %v836_v41  ;;  %v2670_v54 = vmul.u32.u64.high %v2548_v18, %v836_v41, %v2669_v34  ;;  %v2673_v55 = vmul.u32.u64.low %v2548_v18, %v832_v37  ;;  %v2674_v33 = vmul.u32.u64.high %v2548_v18, %v832_v37, %v2673_v55 }
  0xf3   : > { %v1988_v50 = vadd.s32 4294967169, %v1015_v16  ;;  %v1231_v51 = vmul.f32 %v2307_v25, %v1229_v0  ;;  %v1226_v56 = vmul.f32 %v2305_v24, %v1224_v53  ;;  %v646_v59 = vor.u32 4788187, %v645_v3 }
  0xf4   : > { %v828_v43 = vsel %vm822_vm13, %v825_v22, %v827_v38  ;;  %v660_v12 = vadd.s32 3, %v2621_v39  ;;  %vm846_vm15 = vc.u32 %v2670_v54, %v2673_v55  ;;  %v649_v61 = vcvt.s32.f32 %v642_v35 }
  0xf5   : > { %v1021_v45 = vadd.s32 1, %v1988_v50  ;;  %v647_v32 = vand.u32 2147483647, %v646_v59  ;;  %v847_v63 = vadd.s32 1, %v2674_v33  ;;  %v844_v26 = vmul.u32 %v2548_v18, %v828_v43 }
  0xf6   : > { %v1011_v31 = vand.u32 2147483647, %v2550_v19  ;;  %v2687_v7 = vadd.f32 %v1231_v51, %v1226_v56  ;;  %v2690_v23 = vand.u32 3, %v660_v12  ;;  %v2693_v27 = vand.u32 3, %v2621_v39 }
  0xf7   : > { %vm1022_vm1 = vcmp.gt.s32.totalorder %v1021_v45, 0  ;;  %v650_v46 = vmul.f32 %v649_v61, %v647_v32  ;;  %v848_v13 = vsel %vm846_vm15, %v847_v63, %v2674_v33  ;;  %vm659_vm8 = vweird.f32 %v2327_v48 }
  0xf8   : > { %v1023_v9 = vsel %vm1022_vm1, %v1021_v45, 0  ;;  %v849_v20 = vadd.s32 %v848_v13, %v844_v26  ;;  %v1018_v18 = vand.u32 8388607, %v1011_v31  ;;  %v1236_v30 = vand.u32 2139095040, %v2687_v7 }
  0xf9   : > { %v1025_v14 = vand.u32 31, %v1023_v9  ;;  %v651_v22 = vxor.u32 2147483648, %v650_v46  ;;  %v2697_v29 = vshrl.u32 %v1023_v9, 5  ;;  %vm767_vm0 = vcmp.eq.s32.totalorder %v2693_v27, 0 }
  0xfa   : > { %v850_v57 = vadd.s32 536870912, %v849_v20  ;;  %v1019_v38 = vor.u32 8388608, %v1018_v18  ;;  %v1237_v33 = vshrl.u32 %v1236_v30, 23  ;;  %vm662_vm4 = vcmp.lt.s32.totalorder %v2690_v23, 2 }
  0xfb   : > { %v1026_v28 = vsub.s32 32, %v1025_v14  ;;  %v652_v17 = vsel %vm569_vm12, %v651_v22, %v650_v46  ;;  %v1028_v36 = vshll.u32 %v2209_v62, %v1025_v14  ;;  %v1037_v42 = vshll.u32 %v2212_v6, %v1025_v14 }
  0xfc   : > { %v655_v39 = vsel %vm2558_vm2, %v2327_v48, %v652_v17  ;;  %v2708_v40 = vshrl.u32 %v850_v57, 30  ;;  %v1040_v5 = vshll.u32 %v2213_v8, %v1025_v14  ;;  %v1031_v10 = vshll.u32 %v2210_v2, %v1025_v14 }
  0xfd   : > { %v1029_v37 = vshrl.u32 %v2210_v2, %v1026_v28  ;;  %v1032_v60 = vshrl.u32 %v2211_v4, %v1026_v28  ;;  %v1035_v11 = vshrl.u32 %v2212_v6, %v1026_v28  ;;  %v1038_v41 = vshrl.u32 %v2213_v8, %v1026_v28 }
  0xfe   : > { %2119 = vcosq.f32 %v655_v39  ;;  %v1041_v1 = vshrl.u32 %v2214_v15, %v1026_v28  ;;  %v852_v47 = vshll.u32 %v2708_v40, 30  ;;  %v1034_v21 = vshll.u32 %v2211_v4, %v1025_v14 }
  0xff   : > { %2121 = vsinq.f32 %v655_v39  ;;  %v1039_v44 = vor.u32 %v1038_v41, %v1037_v42  ;;  %v1030_v0 = vor.u32 %v1029_v37, %v1028_v36  ;;  %v1033_v53 = vor.u32 %v1032_v60, %v1031_v10 }
 0x100   : > { %v1042_v49 = vor.u32 %v1041_v1, %v1040_v5  ;;  %v2718_v16 = vsub.s32 %v849_v20, %v852_v47  ;;  %v1036_v35 = vor.u32 %v1035_v11, %v1034_v21  ;;  %vm666_vm12 = vcmp.eq.s32.totalorder %v2690_v23, 2 }
 0x101   : > { %vm663_vm2 = vcmp.eq.s32.totalorder %v2690_v23, 0  ;;  %v1027_v3 = vshrl.u32 %v2209_v62, %v1026_v28  ;;  %vm1046_vm3 = vcmp.lt.s32.totalorder %v2697_v29, 4  ;;  %vm766_vm5 = vcmp.lt.s32.totalorder %v2693_v27, 2  ;;  %v1451_v23 = vpop.permute.xlu0 %1450 }
 0x102   : > { %v855_v34 = vsub.s32 0, %v2718_v16  ;;  %vm1043_vm6 = vcmp.lt.s32.totalorder %v2697_v29, 1  ;;  %vm1045_vm7 = vcmp.lt.s32.totalorder %v2697_v29, 3  ;;  %v1052_v50 = vsel %vm1046_vm3, %v1039_v44, 920167782 }
 0x103   : > { %v1056_v51 = vsel %vm1046_vm3, %v1042_v49, 1326507024  ;;  %vm791_vm9 = vcmp.lt.s32.totalorder %v2408_v52, 0  ;;  %v1048_v59 = vsel %vm1046_vm3, %v1036_v35, 2102212464  ;;  %v1051_v43 = vsel %vm1043_vm6, %v1030_v0, %v1033_v53 }
 0x104   : > { %v1981_v56 = vmin.u32 %v855_v34, %v2718_v16  ;;  %v1055_v45 = vsel %vm1043_vm6, %v1033_v53, %v1036_v35  ;;  %vm770_vm10 = vcmp.eq.s32.totalorder %v2693_v27, 2  ;;  %v1053_v12 = vsel %vm1045_vm7, %v1036_v35, %v1052_v50 }
 0x105   : > { %v1057_v32 = vsel %vm1045_vm7, %v1039_v44, %v1056_v51  ;;  %v1059_v61 = vshll.u32 %v1019_v38, 8  ;;  %v875_v26 = vsub.s32 4, %v2708_v40  ;;  %vm1044_vm11 = vcmp.lt.s32.totalorder %v2697_v29, 2 }
 0x106   : > { %v857_v63 = vclz %v1981_v56  ;;  %v1047_v9 = vsel %vm1043_vm6, %v1027_v3, %v1030_v0  ;;  %v1049_v13 = vsel %vm1045_vm7, %v1033_v53, %v1048_v59  ;;  %v1054_v14 = vsel %vm1044_vm11, %v1051_v43, %v1053_v12 }
 0x107   : > { %v1058_v20 = vsel %vm1044_vm11, %v1055_v45, %v1057_v32  ;;  %v1996_v22 = vadd.s32 4294967169, %v1237_v33  ;;  %v2755_v37 = vmul.u32.u64.low %v1059_v61, %v1054_v14  ;;  %v2756_v60 = vmul.u32.u64.high %v1059_v61, %v1054_v14, %v2755_v37  ;;  %v1446_v33 = vpop.permute.xlu1 %1445 }
 0x108   : > { %v2120_v46 = vpop.eup %2119  ;;  %v1982_v18 = vadd.s32 4294967294, %v857_v63  ;;  %v2752_v30 = vmul.u32.u64.low %v1059_v61, %v1058_v20  ;;  %v2753_v17 = vmul.u32.u64.high %v1059_v61, %v1058_v20, %v2752_v30  ;;  %v845_v42 = vadd.s32 %v2673_v55, %v2670_v54 }
 0x109   : > { %v2122_v28 = vpop.eup %2121  ;;  %v667_v57 = vxor.u32 2147483648, %v2120_v46  ;;  %v1243_v39 = vadd.s32 1, %v1996_v22  ;;  %v1050_v54 = vsel %vm1044_vm11, %v1047_v9, %v1049_v13  ;;  %v876_v53 = vsel %vm791_vm9, %v875_v26, %v2708_v40 }
 0x10a   : > { %v664_v36 = vxor.u32 2147483648, %v2122_v28  ;;  %vm1983_vm13 = vcmp.lt.s32.totalorder %v1982_v18, 0  ;;  %vm1068_vm15 = vc.u32 %v2753_v17, %v2755_v37  ;;  %v1069_v29 = vadd.s32 1, %v2756_v60 }
 0x10b   : > { %v668_v11 = vsel %vm666_vm12, %v667_v57, %v2122_v28  ;;  %v772_v41 = vsel %vm770_vm10, %v667_v57, %v2122_v28  ;;  %v860_v47 = vsel %vm1983_vm13, 0, %v1982_v18  ;;  %vm1244_vm14 = vcmp.gt.s32.totalorder %v1243_v39, 0 }
 0x10c   : > { %v665_v5 = vsel %vm663_vm2, %v2120_v46, %v664_v36  ;;  %v769_v1 = vsel %vm767_vm0, %v2120_v46, %v664_v36  ;;  %v861_v44 = vsub.s32 32, %v860_v47  ;;  %v865_v0 = vsub.s32 4294967266, %v860_v47 }
 0x10d   : > { %v669_v10 = vsel %vm662_vm4, %v665_v5, %v668_v11  ;;  %v773_v21 = vsel %vm766_vm5, %v769_v1, %v772_v41  ;;  %v1245_v35 = vsel %vm1244_vm14, %v1243_v39, 0  ;;  %v862_v38 = vshll.u32 %v2718_v16, %v860_v47 }
 0x10e   : > { %v670_v55 = vsel %vm659_vm8, nan, %v669_v10  ;;  %v774_v49 = vsel %vm659_vm8, nan, %v773_v21  ;;  %v863_v27 = vshrl.u32 %v845_v42, %v861_v44  ;;  %v866_v34 = vadd.s32 127, %v865_v0 }
 0x10f   : > { %671 = vst [vmem:[%s2615_s13 + $0x10] sm:$0xff] %v670_v55  ;;  %775 = vst [vmem:[%s2615_s13 + $0x50] sm:$0xff] %v774_v49  ;;  %v1066_v48 = vmul.u32 %v1059_v61, %v1050_v54  ;;  %v1247_v3 = vand.u32 31, %v1245_v35  ;;  %vm2790_vm1 = vcmp.le.f32.partialorder %v789_v58, 0.7853982  ;;  %v1070_v50 = vsel %vm1068_vm15, %v1069_v29, %v2756_v60 }
 0x110   : > { %v1453_v51 = vmul.f32 %v2307_v25, %v1451_v23  ;;  %v864_v56 = vor.u32 %v863_v27, %v862_v38  ;;  %v867_v59 = vshll.u32 %v866_v34, 23  ;;  %v878_v16 = vsel %vm2790_vm1, 0, %v876_v53 }
 0x111   : > { %v1071_v43 = vadd.s32 %v1070_v50, %v1066_v48  ;;  %v1248_v45 = vsub.s32 32, %v1247_v3  ;;  %v1233_v12 = vand.u32 2147483647, %v2687_v7  ;;  %v2799_v32 = vshrl.u32 %v1245_v35, 5 }
 0x112   : > { %v1448_v58 = vmul.f32 %v2305_v24, %v1446_v33  ;;  %v868_v61 = vor.u32 4788187, %v867_v59  ;;  %v1250_v26 = vshll.u32 %v2209_v62, %v1247_v3  ;;  %v1259_v14 = vshll.u32 %v2212_v6, %v1247_v3 }
 0x113   : > { %v1072_v63 = vadd.s32 536870912, %v1071_v43  ;;  %v1251_v9 = vshrl.u32 %v2210_v2, %v1248_v45  ;;  %v1254_v46 = vshrl.u32 %v2211_v4, %v1248_v45  ;;  %v1257_v13 = vshrl.u32 %v2212_v6, %v1248_v45 }
 0x114   : > { %v1260_v20 = vshrl.u32 %v2213_v8, %v1248_v45  ;;  %v869_v22 = vand.u32 2147483647, %v868_v61  ;;  %v871_v28 = vcvt.s32.f32 %v864_v56  ;;  %v1253_v18 = vshll.u32 %v2210_v2, %v1247_v3 }
 0x115   : > { %v1073_v57 = vshrl.u32 %v1072_v63, 30  ;;  %v1240_v30 = vand.u32 8388607, %v1233_v12  ;;  %v1256_v36 = vshll.u32 %v2211_v4, %v1247_v3  ;;  %v1252_v41 = vor.u32 %v1251_v9, %v1250_v26 }
 0x116   : > { %v1261_v60 = vor.u32 %v1260_v20, %v1259_v14  ;;  %v872_v39 = vmul.f32 %v871_v28, %v869_v22  ;;  %v1255_v42 = vor.u32 %v1254_v46, %v1253_v18  ;;  %v882_v5 = vadd.s32 3, %v878_v16 }
 0x117   : > { %v1074_v11 = vshll.u32 %v1073_v57, 30  ;;  %v1258_v1 = vor.u32 %v1257_v13, %v1256_v36  ;;  %v1263_v47 = vshrl.u32 %v2214_v15, %v1248_v45  ;;  %v2813_v10 = vadd.f32 %v1453_v51, %v1448_v58 }
 0x118   : > { %v873_v21 = vxor.u32 2147483648, %v872_v39  ;;  %v2815_v44 = vand.u32 3, %v878_v16  ;;  %vm1013_vm12 = vcmp.lt.s32.totalorder %v2550_v19, 0  ;;  %vm1268_vm2 = vcmp.lt.s32.totalorder %v2799_v32, 4 }
 0x119   : > { %v2818_v54 = vsub.s32 %v1071_v43, %v1074_v11  ;;  %v1241_v55 = vor.u32 8388608, %v1240_v30  ;;  %v1262_v49 = vshll.u32 %v2213_v8, %v1247_v3  ;;  %vm1265_vm0 = vcmp.lt.s32.totalorder %v2799_v32, 1 }
 0x11a   : > { %v1274_v0 = vsel %vm1268_vm2, %v1261_v60, 920167782  ;;  %v874_v53 = vsel %vm791_vm9, %v873_v21, %v872_v39  ;;  %vm1267_vm3 = vcmp.lt.s32.totalorder %v2799_v32, 3  ;;  %v1273_v27 = vsel %vm1265_vm0, %v1252_v41, %v1255_v42 }
 0x11b   : > { %v1077_v23 = vsub.s32 0, %v2818_v54  ;;  %v877_v29 = vsel %vm2790_vm1, %v2408_v52, %v874_v53  ;;  %v1264_v35 = vor.u32 %v1263_v47, %v1262_v49  ;;  %v1270_v38 = vsel %vm1268_vm2, %v1258_v1, 2102212464 }
 0x11c   : > { %v1275_v34 = vsel %vm1267_vm3, %v1258_v1, %v1274_v0  ;;  %2123 = vcosq.f32 %v877_v29  ;;  %v1249_v3 = vshrl.u32 %v2209_v62, %v1248_v45  ;;  %vm1266_vm4 = vcmp.lt.s32.totalorder %v2799_v32, 2 }
 0x11d   : > { %v1989_v48 = vmin.u32 %v1077_v23, %v2818_v54  ;;  %2125 = vsinq.f32 %v877_v29  ;;  %v1097_v33 = vsub.s32 4, %v1073_v57  ;;  %v1276_v40 = vsel %vm1266_vm4, %v1273_v27, %v1275_v34 }
 0x11e   : > { %v1281_v50 = vshll.u32 %v1241_v55, 8  ;;  %v1269_v56 = vsel %vm1265_vm0, %v1249_v3, %v1252_v41  ;;  %v1271_v59 = vsel %vm1267_vm3, %v1255_v42, %v1270_v38  ;;  %v1277_v43 = vsel %vm1265_vm0, %v1255_v42, %v1258_v1  ;;  %v1673_v3 = vpop.permute.xlu0 %1672 }
 0x11f   : > { %v1079_v51 = vclz %v1989_v48  ;;  %v883_v16 = vand.u32 3, %v882_v5  ;;  %v1278_v45 = vsel %vm1268_vm2, %v1264_v35, 1326507024  ;;  %vm2857_vm5 = vcmp.le.f32.partialorder %v1011_v31, 0.7853982 }
 0x120   : > { %v2851_v58 = vmul.u32.u64.low %v1281_v50, %v1276_v40  ;;  %v2852_v61 = vmul.u32.u64.high %v1281_v50, %v1276_v40, %v2851_v58  ;;  %v1279_v9 = vsel %vm1267_vm3, %v1261_v60, %v1278_v45  ;;  %v1458_v46 = vand.u32 2139095040, %v2813_v10 }
 0x121   : > { %v1990_v26 = vadd.s32 4294967294, %v1079_v51  ;;  %vm989_vm6 = vcmp.eq.s32.totalorder %v2815_v44, 0  ;;  %v1098_v13 = vsel %vm1013_vm12, %v1097_v33, %v1073_v57  ;;  %v1272_v14 = vsel %vm1266_vm4, %v1269_v56, %v1271_v59  ;;  %v1668_v33 = vpop.permute.xlu1 %1667 }
 0x122   : > { %v1280_v31 = vsel %vm1266_vm4, %v1277_v43, %v1279_v9  ;;  %vm988_vm7 = vcmp.lt.s32.totalorder %v2815_v44, 2  ;;  %v1459_v28 = vshrl.u32 %v1458_v46, 23  ;;  %vm881_vm9 = vweird.f32 %v2408_v52 }
 0x123   : > { %vm1991_vm8 = vcmp.lt.s32.totalorder %v1990_v26, 0  ;;  %v2872_v20 = vmul.u32.u64.low %v1281_v50, %v1280_v31  ;;  %v2873_v22 = vmul.u32.u64.high %v1281_v50, %v1280_v31, %v2872_v20  ;;  %vm884_vm10 = vcmp.lt.s32.totalorder %v883_v16, 2 }
 0x124   : > { %vm992_vm11 = vcmp.eq.s32.totalorder %v2815_v44, 2  ;;  %v1082_v18 = vsel %vm1991_vm8, 0, %v1990_v26  ;;  %v1291_v57 = vadd.s32 1, %v2852_v61  ;;  %v1067_v30 = vadd.s32 %v2755_v37, %v2753_v17 }
 0x125   : > { %v1083_v32 = vsub.s32 32, %v1082_v18  ;;  %v1087_v36 = vsub.s32 4294967266, %v1082_v18  ;;  %v2004_v60 = vadd.s32 4294967169, %v1459_v28  ;;  %vm885_vm13 = vcmp.eq.s32.totalorder %v883_v16, 0 }
 0x126   : > { %v1100_v39 = vsel %vm2857_vm5, 0, %v1098_v13  ;;  %v1288_v11 = vmul.u32 %v1281_v50, %v1272_v14  ;;  %v1455_v41 = vand.u32 2147483647, %v2813_v10  ;;  %v2124_v42 = vpop.eup %2123  ;;  %v1084_v5 = vshll.u32 %v2818_v54, %v1082_v18 }
 0x127   : > { %v1085_v1 = vshrl.u32 %v1067_v30, %v1083_v32  ;;  %v1088_v47 = vadd.s32 127, %v1087_v36  ;;  %vm1290_vm14 = vc.u32 %v2873_v22, %v2851_v58  ;;  %v2126_v21 = vpop.eup %2125  ;;  %vm888_vm15 = vcmp.eq.s32.totalorder %v883_v16, 2 }
 0x128   : > { %v889_v17 = vxor.u32 2147483648, %v2124_v42  ;;  %v1292_v37 = vsel %vm1290_vm14, %v1291_v57, %v2852_v61  ;;  %v1465_v55 = vadd.s32 1, %v2004_v60  ;;  %v886_v49 = vxor.u32 2147483648, %v2126_v21 }
 0x129   : > { %v1086_v0 = vor.u32 %v1085_v1, %v1084_v5  ;;  %v1089_v53 = vshll.u32 %v1088_v47, 23  ;;  %v1293_v23 = vadd.s32 %v1292_v37, %v1288_v11  ;;  %v1104_v54 = vadd.s32 3, %v1100_v39 }
 0x12a   : > { %v890_v27 = vsel %vm888_vm15, %v889_v17, %v2126_v21  ;;  %v994_v29 = vsel %vm992_vm11, %v889_v17, %v2126_v21  ;;  %vm1466_vm1 = vcmp.gt.s32.totalorder %v1465_v55, 0  ;;  %v887_v35 = vsel %vm885_vm13, %v2124_v42, %v886_v49 }
 0x12b   : > { %v991_v38 = vsel %vm989_vm6, %v2124_v42, %v886_v49  ;;  %v1090_v34 = vor.u32 4788187, %v1089_v53  ;;  %v1462_v48 = vand.u32 8388607, %v1455_v41  ;;  %v891_v40 = vsel %vm884_vm10, %v887_v35, %v890_v27 }
 0x12c   : > { %v995_v50 = vsel %vm988_vm7, %v991_v38, %v994_v29  ;;  %v1294_v51 = vadd.s32 536870912, %v1293_v23  ;;  %v1467_v56 = vsel %vm1466_vm1, %v1465_v55, 0  ;;  %v892_v59 = vsel %vm881_vm9, nan, %v891_v40 }
 0x12d   : > { %v996_v43 = vsel %vm881_vm9, nan, %v995_v50  ;;  %v1091_v45 = vand.u32 2147483647, %v1090_v34  ;;  %v1093_v61 = vcvt.s32.f32 %v1086_v0  ;;  %893 = vst [vmem:[%s2615_s13 + $0x18] sm:$0xff] %v892_v59  ;;  %v1469_v9 = vand.u32 31, %v1467_v56 }
 0x12e   : > { %997 = vst [vmem:[%s2615_s13 + $0x58] sm:$0xff] %v996_v43  ;;  %v2903_v26 = vshrl.u32 %v1294_v51, 30  ;;  %v1675_v16 = vmul.f32 %v2307_v25, %v1673_v3  ;;  %v1670_v44 = vmul.f32 %v2305_v24, %v1668_v33  ;;  %v2908_v20 = vand.u32 3, %v1104_v54 }
 0x12f   : > { %v1094_v46 = vmul.f32 %v1093_v61, %v1091_v45  ;;  %v1470_v14 = vsub.s32 32, %v1469_v9  ;;  %v2910_v52 = vand.u32 3, %v1100_v39  ;;  %v1463_v28 = vor.u32 8388608, %v1462_v48 }
 0x130   : > { %v1296_v13 = vshll.u32 %v2903_v26, 30  ;;  %v2914_v57 = vshrl.u32 %v1467_v56, 5  ;;  %v2917_v32 = vadd.f32 %v1675_v16, %v1670_v44  ;;  %v1472_v25 = vshll.u32 %v2209_v62, %v1469_v9 }
 0x131   : > { %v1095_v31 = vxor.u32 2147483648, %v1094_v46  ;;  %v1473_v30 = vshrl.u32 %v2210_v2, %v1470_v14  ;;  %v1476_v36 = vshrl.u32 %v2211_v4, %v1470_v14  ;;  %v1479_v60 = vshrl.u32 %v2212_v6, %v1470_v14 }
 0x132   : > { %v2912_v18 = vsub.s32 %v1293_v23, %v1296_v13  ;;  %v1475_v42 = vshll.u32 %v2210_v2, %v1469_v9  ;;  %v1478_v5 = vshll.u32 %v2211_v4, %v1469_v9  ;;  %v1289_v1 = vadd.s32 %v2851_v58, %v2873_v22 }
 0x133   : > { %v1096_v24 = vsel %vm1013_vm12, %v1095_v31, %v1094_v46  ;;  %v1474_v47 = vor.u32 %v1473_v30, %v1472_v25  ;;  %v2932_v21 = vshll.u32 %v1463_v28, 8  ;;  %v1481_v63 = vshll.u32 %v2212_v6, %v1469_v9 }
 0x134   : > { %v1099_v39 = vsel %vm2857_vm5, %v2550_v19, %v1096_v24  ;;  %v1299_v11 = vsub.s32 0, %v2912_v18  ;;  %v1477_v37 = vor.u32 %v1476_v36, %v1475_v42  ;;  %v1480_v55 = vor.u32 %v1479_v60, %v1478_v5 }
 0x135   : > { %2127 = vcosq.f32 %v1099_v39  ;;  %v1482_v49 = vshrl.u32 %v2213_v8, %v1470_v14  ;;  %v1677_v0 = vand.u32 2147483647, %v2917_v32  ;;  %v1680_v53 = vand.u32 2139095040, %v2917_v32 }
 0x136   : > { %2129 = vsinq.f32 %v1099_v39  ;;  %v1997_v17 = vmin.u32 %v1299_v11, %v2912_v18  ;;  %v1471_v27 = vshrl.u32 %v2209_v62, %v1470_v14  ;;  %vm1487_vm12 = vcmp.lt.s32.totalorder %v2914_v57, 1 }
 0x137   : > { %vm1489_vm2 = vcmp.lt.s32.totalorder %v2914_v57, 3  ;;  %vm1110_vm0 = vcmp.eq.s32.totalorder %v2908_v20, 2  ;;  %vm1214_vm3 = vcmp.eq.s32.totalorder %v2910_v52, 2  ;;  %v1483_v58 = vor.u32 %v1482_v49, %v1481_v63 }
 0x138   : > { %v1301_v23 = vclz %v1997_v17  ;;  %v1484_v22 = vshll.u32 %v2213_v8, %v1469_v9  ;;  %v1485_v29 = vshrl.u32 %v2214_v15, %v1470_v14  ;;  %vm1490_vm4 = vcmp.lt.s32.totalorder %v2914_v57, 4 }
 0x139   : > { %vm1107_vm5 = vcmp.eq.s32.totalorder %v2908_v20, 0  ;;  %vm1211_vm6 = vcmp.eq.s32.totalorder %v2910_v52, 0  ;;  %v1491_v35 = vsel %vm1487_vm12, %v1471_v27, %v1474_v47  ;;  %v1492_v38 = vsel %vm1490_vm4, %v1480_v55, 2102212464 }
 0x13a   : > { %v1998_v54 = vadd.s32 4294967294, %v1301_v23  ;;  %v1495_v34 = vsel %vm1487_vm12, %v1474_v47, %v1477_v37  ;;  %vm1106_vm7 = vcmp.lt.s32.totalorder %v2908_v20, 2  ;;  %vm1210_vm8 = vcmp.lt.s32.totalorder %v2910_v52, 2 }
 0x13b   : > { %vm1235_vm9 = vcmp.lt.s32.totalorder %v2687_v7, 0  ;;  %v1486_v48 = vor.u32 %v1485_v29, %v1484_v22  ;;  %v1493_v3 = vsel %vm1489_vm2, %v1477_v37, %v1492_v38  ;;  %v1496_v33 = vsel %vm1490_vm4, %v1483_v58, 920167782 }
 0x13c   : > { %v1681_v40 = vshrl.u32 %v1680_v53, 23  ;;  %vm1103_vm10 = vweird.f32 %v2550_v19  ;;  %vm1999_vm11 = vcmp.lt.s32.totalorder %v1998_v54, 0  ;;  %vm1488_vm13 = vcmp.lt.s32.totalorder %v2914_v57, 2 }
 0x13d   : > { %v1497_v50 = vsel %vm1489_vm2, %v1480_v55, %v1496_v33  ;;  %v1499_v51 = vsel %vm1487_vm12, %v1477_v37, %v1480_v55  ;;  %v1304_v56 = vsel %vm1999_vm11, 0, %v1998_v54  ;;  %v1319_v59 = vsub.s32 4, %v2903_v26 }
 0x13e   : > { %v1498_v43 = vsel %vm1488_vm13, %v1495_v34, %v1497_v50  ;;  %v1500_v45 = vsel %vm1490_vm4, %v1486_v48, 1326507024  ;;  %vm2973_vm14 = vcmp.le.f32.partialorder %v1233_v12, 0.7853982  ;;  %v1305_v9 = vsub.s32 32, %v1304_v56 }
 0x13f   : > { %v1309_v16 = vsub.s32 4294967266, %v1304_v56  ;;  %v1494_v44 = vsel %vm1488_vm13, %v1491_v35, %v1493_v3  ;;  %v1501_v46 = vsel %vm1489_vm2, %v1483_v58, %v1500_v45  ;;  %v2128_v13 = vpop.eup %2127  ;;  %v2012_v30 = vadd.s32 4294967169, %v1681_v40 }
 0x140   : > { %v1502_v14 = vsel %vm1488_vm13, %v1499_v51, %v1501_v46  ;;  %v2980_v31 = vmul.u32.u64.low %v2932_v21, %v1498_v43  ;;  %v2981_v28 = vmul.u32.u64.high %v2932_v21, %v1498_v43, %v2980_v31  ;;  %v2130_v24 = vpop.eup %2129  ;;  %v1111_v25 = vxor.u32 2147483648, %v2128_v13 }
 0x141   : > { %v1306_v12 = vshll.u32 %v2912_v18, %v1304_v56  ;;  %v1307_v36 = vshrl.u32 %v1289_v1, %v1305_v9  ;;  %v1310_v60 = vadd.s32 127, %v1309_v16  ;;  %v1108_v39 = vxor.u32 2147483648, %v2130_v24 }
 0x142   : > { %v2986_v11 = vmul.u32.u64.low %v2932_v21, %v1502_v14  ;;  %v2987_v42 = vmul.u32.u64.high %v2932_v21, %v1502_v14, %v2986_v11  ;;  %v1687_v57 = vadd.s32 1, %v2012_v30  ;;  %v1112_v5 = vsel %vm1110_vm0, %v1111_v25, %v2130_v24 }
 0x143   : > { %v1216_v47 = vsel %vm1214_vm3, %v1111_v25, %v2130_v24  ;;  %v1308_v17 = vor.u32 %v1307_v36, %v1306_v12  ;;  %v1311_v37 = vshll.u32 %v1310_v60, 23  ;;  %v1109_v18 = vsel %vm1107_vm5, %v2128_v13, %v1108_v39 }
 0x144   : > { %v1213_v1 = vsel %vm1211_vm6, %v2128_v13, %v1108_v39  ;;  %v1513_v55 = vadd.s32 1, %v2981_v28  ;;  %vm1688_vm15 = vcmp.gt.s32.totalorder %v1687_v57, 0  ;;  %v1113_v63 = vsel %vm1106_vm7, %v1109_v18, %v1112_v5 }
 0x145   : > { %v1217_v49 = vsel %vm1210_vm8, %v1213_v1, %v1216_v47  ;;  %v1312_v53 = vor.u32 4788187, %v1311_v37  ;;  %v1320_v23 = vsel %vm1235_vm9, %v1319_v59, %v2903_v26  ;;  %v1114_v27 = vsel %vm1103_vm10, nan, %v1113_v63 }
 0x146   : > { %v1218_v58 = vsel %vm1103_vm10, nan, %v1217_v49  ;;  %v1510_v22 = vmul.u32 %v2932_v21, %v1494_v44  ;;  %vm1512_vm1 = vc.u32 %v2987_v42, %v2980_v31  ;;  %1115 = vst [vmem:[%s2615_s13 + $0x20] sm:$0xff] %v1114_v27  ;;  %v1315_v52 = vcvt.s32.f32 %v1308_v17 }
 0x147   : > { %1219 = vst [vmem:[%s2615_s13 + $0x60] sm:$0xff] %v1218_v58  ;;  %v1313_v20 = vand.u32 2147483647, %v1312_v53  ;;  %v1514_v29 = vsel %vm1512_vm1, %v1513_v55, %v2981_v28  ;;  %v1689_v54 = vsel %vm1688_vm15, %v1687_v57, 0  ;;  %v1322_v26 = vsel %vm2973_vm14, 0, %v1320_v23 }
 0x148   : > { %v1515_v35 = vadd.s32 %v1514_v29, %v1510_v22  ;;  %v1691_v38 = vand.u32 31, %v1689_v54  ;;  %v1326_v21 = vadd.s32 3, %v1322_v26  ;;  %v1684_v33 = vand.u32 8388607, %v1677_v0 }
 0x149   : > { %v1316_v34 = vmul.f32 %v1315_v52, %v1313_v20  ;;  %v1690_v40 = vshrl.u32 %v1689_v54, 5  ;;  %v1431_v12 = vand.u32 3, %v1322_v26  ;;  %vm1325_vm5 = vweird.f32 %v2687_v7 }
 0x14a   : > { %v1516_v19 = vadd.s32 536870912, %v1515_v35  ;;  %v1692_v48 = vsub.s32 32, %v1691_v38  ;;  %v1700_v59 = vshll.u32 %v2211_v4, %v1691_v38  ;;  %v1703_v9 = vshll.u32 %v2212_v6, %v1691_v38 }
 0x14b   : > { %v1317_v3 = vxor.u32 2147483648, %v1316_v34  ;;  %v1694_v13 = vshll.u32 %v2209_v62, %v1691_v38  ;;  %v1697_v14 = vshll.u32 %v2210_v2, %v1691_v38  ;;  %v1685_v36 = vor.u32 8388608, %v1684_v33 }
 0x14c   : > { %v3019_v50 = vshrl.u32 %v1516_v19, 30  ;;  %v1695_v51 = vshrl.u32 %v2210_v2, %v1692_v48  ;;  %v1698_v56 = vshrl.u32 %v2211_v4, %v1692_v48  ;;  %v1701_v45 = vshrl.u32 %v2212_v6, %v1692_v48 }
 0x14d   : > { %v1318_v43 = vsel %vm1235_vm9, %v1317_v3, %v1316_v34  ;;  %v1704_v16 = vshrl.u32 %v2213_v8, %v1692_v48  ;;  %v1707_v30 = vshrl.u32 %v2214_v15, %v1692_v48  ;;  %v1706_v61 = vshll.u32 %v2213_v8, %v1691_v38 }
 0x14e   : > { %v1321_v44 = vsel %vm2973_vm14, %v2687_v7, %v1318_v43  ;;  %v1518_v46 = vshll.u32 %v3019_v50, 30  ;;  %v1702_v4 = vor.u32 %v1701_v45, %v1700_v59  ;;  %v1696_v6 = vor.u32 %v1695_v51, %v1694_v13 }
 0x14f   : > { %2131 = vcosq.f32 %v1321_v44  ;;  %v1705_v28 = vor.u32 %v1704_v16, %v1703_v9  ;;  %v1699_v25 = vor.u32 %v1698_v56, %v1697_v14  ;;  %v1327_v60 = vand.u32 3, %v1326_v21 }
 0x150   : > { %2133 = vsinq.f32 %v1321_v44  ;;  %v3036_v24 = vsub.s32 %v1515_v35, %v1518_v46  ;;  %vm1712_vm12 = vcmp.lt.s32.totalorder %v1690_v40, 4  ;;  %v1708_v11 = vor.u32 %v1707_v30, %v1706_v61 }
 0x151   : > { %vm1709_vm2 = vcmp.lt.s32.totalorder %v1690_v40, 1  ;;  %v1714_v2 = vsel %vm1712_vm12, %v1702_v4, 2102212464  ;;  %v1718_v57 = vsel %vm1712_vm12, %v1705_v28, 920167782  ;;  %v1693_v5 = vshrl.u32 %v2209_v62, %v1692_v48 }
 0x152   : > { %v1521_v39 = vsub.s32 0, %v3036_v24  ;;  %vm1711_vm0 = vcmp.lt.s32.totalorder %v1690_v40, 3  ;;  %v1717_v47 = vsel %vm1709_vm2, %v1696_v6, %v1699_v25  ;;  %vm1432_vm3 = vcmp.lt.s32.totalorder %v1431_v12, 2 }
 0x153   : > { %vm1710_vm4 = vcmp.lt.s32.totalorder %v1690_v40, 2  ;;  %v1719_v8 = vsel %vm1711_vm0, %v1702_v4, %v1718_v57  ;;  %v1725_v17 = vshll.u32 %v1685_v36, 8  ;;  %v1713_v18 = vsel %vm1709_vm2, %v1693_v5, %v1696_v6 }
 0x154   : > { %v2005_v15 = vmin.u32 %v1521_v39, %v3036_v24  ;;  %v1715_v1 = vsel %vm1711_vm0, %v1699_v25, %v1714_v2  ;;  %v1721_v55 = vsel %vm1709_vm2, %v1699_v25, %v1702_v4  ;;  %vm1433_vm6 = vcmp.eq.s32.totalorder %v1431_v12, 0 }
 0x155   : > { %vm1436_vm7 = vcmp.eq.s32.totalorder %v1431_v12, 2  ;;  %v1720_v63 = vsel %vm1710_vm4, %v1717_v47, %v1719_v8  ;;  %v1722_v62 = vsel %vm1712_vm12, %v1708_v11, 1326507024  ;;  %vm1328_vm8 = vcmp.lt.s32.totalorder %v1327_v60, 2 }
 0x156   : > { %v1523_v37 = vclz %v2005_v15  ;;  %v1723_v53 = vsel %vm1711_vm0, %v1705_v28, %v1722_v62  ;;  %v3050_v23 = vmul.u32.u64.low %v1725_v17, %v1720_v63  ;;  %v3051_v27 = vmul.u32.u64.high %v1725_v17, %v1720_v63, %v3050_v23 }
 0x157   : > { %vm1329_vm9 = vcmp.eq.s32.totalorder %v1327_v60, 0  ;;  %v1716_v22 = vsel %vm1710_vm4, %v1713_v18, %v1715_v1  ;;  %v1724_v20 = vsel %vm1710_vm4, %v1721_v55, %v1723_v53  ;;  %vm1332_vm11 = vcmp.eq.s32.totalorder %v1327_v60, 2 }
 0x158   : > { %v2006_v49 = vadd.s32 4294967294, %v1523_v37  ;;  %v3056_v54 = vmul.u32.u64.low %v1725_v17, %v1724_v20  ;;  %v3057_v26 = vmul.u32.u64.high %v1725_v17, %v1724_v20, %v3056_v54  ;;  %v1511_v38 = vadd.s32 %v2980_v31, %v2987_v42 }
 0x159   : > { %v2132_v58 = vpop.eup %2131  ;;  %v1732_v21 = vmul.u32 %v1725_v17, %v1716_v22  ;;  %v1735_v56 = vadd.s32 1, %v3051_v27  ;;  %v1541_v7 = vsub.s32 4, %v3019_v50  ;;  %vm1457_vm14 = vcmp.lt.s32.totalorder %v2813_v10, 0 }
 0x15a   : > { %v2134_v52 = vpop.eup %2133  ;;  %v1333_v29 = vxor.u32 2147483648, %v2132_v58  ;;  %vm2007_vm10 = vcmp.lt.s32.totalorder %v2006_v49, 0  ;;  %vm1734_vm13 = vc.u32 %v3057_v26, %v3050_v23  ;;  %vm1456_vm15 = vcmp.le.f32.partialorder %v1455_v41, 0.7853982 }
 0x15b   : > { %v1330_v35 = vxor.u32 2147483648, %v2134_v52  ;;  %v1526_v34 = vsel %vm2007_vm10, 0, %v2006_v49  ;;  %v1736_v44 = vsel %vm1734_vm13, %v1735_v56, %v3051_v27  ;;  %v1542_v39 = vsel %vm1457_vm14, %v1541_v7, %v3019_v50 }
 0x15c   : > { %v1334_v19 = vsel %vm1332_vm11, %v1333_v29, %v2134_v52  ;;  %v1438_v48 = vsel %vm1436_vm7, %v1333_v29, %v2134_v52  ;;  %v1527_v3 = vsub.s32 32, %v1526_v34  ;;  %v1531_v51 = vsub.s32 4294967266, %v1526_v34 }
 0x15d   : > { %v1331_v33 = vsel %vm1329_vm9, %v2132_v58, %v1330_v35  ;;  %v1435_v40 = vsel %vm1433_vm6, %v2132_v58, %v1330_v35  ;;  %v1528_v31 = vshll.u32 %v3036_v24, %v1526_v34  ;;  %v1737_v14 = vadd.s32 %v1736_v44, %v1732_v21 }
 0x15e   : > { %v1335_v59 = vsel %vm1328_vm8, %v1331_v33, %v1334_v19  ;;  %v1439_v43 = vsel %vm1432_vm3, %v1435_v40, %v1438_v48  ;;  %v1529_v42 = vshrl.u32 %v1511_v38, %v1527_v3  ;;  %v1532_v16 = vadd.s32 127, %v1531_v51 }
 0x15f   : > { %v1336_v45 = vsel %vm1325_vm5, nan, %v1335_v59  ;;  %v1440_v9 = vsel %vm1325_vm5, nan, %v1439_v43  ;;  %v1738_v28 = vadd.s32 536870912, %v1737_v14  ;;  %v1544_v15 = vsel %vm1456_vm15, 0, %v1542_v39 }
 0x160   : > { %1337 = vst [vmem:[%s2615_s13 + $0x28] sm:$0xff] %v1336_v45  ;;  %1441 = vst [vmem:[%s2615_s13 + $0x68] sm:$0xff] %v1440_v9  ;;  %v1530_v46 = vor.u32 %v1529_v42, %v1528_v31  ;;  %v1533_v13 = vshll.u32 %v1532_v16, 23  ;;  %v1548_v47 = vadd.s32 3, %v1544_v15  ;;  %v1653_v17 = vand.u32 3, %v1544_v15 }
 0x161   : > { %v1739_v6 = vshrl.u32 %v1738_v28, 30  ;;  %v1733_v41 = vadd.s32 %v3050_v23, %v3057_v26  ;;  %vm1547_vm6 = vweird.f32 %v2813_v10  ;;  %vm1679_vm7 = vcmp.lt.s32.totalorder %v2917_v32, 0 }
 0x162   : > { %v1534_v4 = vor.u32 4788187, %v1533_v13  ;;  %v1537_v24 = vcvt.s32.f32 %v1530_v46  ;;  %v1549_v18 = vand.u32 3, %v1548_v47  ;;  %vm1654_vm12 = vcmp.lt.s32.totalorder %v1653_v17, 2 }
 0x163   : > { %v1740_v12 = vshll.u32 %v1739_v6, 30  ;;  %vm1658_vm2 = vcmp.eq.s32.totalorder %v1653_v17, 2  ;;  %vm1655_vm4 = vcmp.eq.s32.totalorder %v1653_v17, 0  ;;  %v1763_v33 = vsub.s32 4, %v1739_v6 }
 0x164   : > { %v1535_v30 = vand.u32 2147483647, %v1534_v4  ;;  %vm1554_vm0 = vcmp.eq.s32.totalorder %v1549_v18, 2  ;;  %vm1551_vm3 = vcmp.eq.s32.totalorder %v1549_v18, 0  ;;  %vm1550_vm5 = vcmp.lt.s32.totalorder %v1549_v18, 2 }
 0x165   : > { %v1741_v61 = vsub.s32 %v1737_v14, %v1740_v12  ;;  %vm1678_vm8 = vcmp.le.f32.partialorder %v1677_v0, 0.7853982 }
 0x166   : > { %v1538_v25 = vmul.f32 %v1537_v24, %v1535_v30 }
 0x167   : > { %v1743_v11 = vsub.s32 0, %v1741_v61 }
 0x168   : > { %v1539_v36 = vxor.u32 2147483648, %v1538_v25 }
 0x169   : > { %v2013_v57 = vmin.u32 %v1743_v11, %v1741_v61 }
 0x16a   : > { %v1540_v60 = vsel %vm1457_vm14, %v1539_v36, %v1538_v25 }
 0x16b   : > { %v1543_v2 = vsel %vm1456_vm15, %v2813_v10, %v1540_v60  ;;  %v1745_v5 = vclz %v2013_v57  ;;  %v1764_v10 = vsel %vm1679_vm7, %v1763_v33, %v1739_v6 }
 0x16c   : > { %2135 = vcosq.f32 %v1543_v2  ;;  %v1766_v59 = vsel %vm1678_vm8, 0, %v1764_v10 }
 0x16d   : > { %2137 = vsinq.f32 %v1543_v2  ;;  %v2014_v8 = vadd.s32 4294967294, %v1745_v5  ;;  %v1770_v43 = vadd.s32 3, %v1766_v59  ;;  %v1875_v42 = vand.u32 3, %v1766_v59 }
 0x16f   : > { %vm2015_vm1 = vcmp.lt.s32.totalorder %v2014_v8, 0  ;;  %v1771_v31 = vand.u32 3, %v1770_v43  ;;  %vm1880_vm10 = vcmp.eq.s32.totalorder %v1875_v42, 2  ;;  %vm1877_vm13 = vcmp.eq.s32.totalorder %v1875_v42, 0 }
 0x170   : > { %v1748_v37 = vsel %vm2015_vm1, 0, %v2014_v8  ;;  %vm1876_vm15 = vcmp.lt.s32.totalorder %v1875_v42, 2  ;;  %vm1769_vm1 = vweird.f32 %v2917_v32 }
 0x171   : > { %v1749_v1 = vsub.s32 32, %v1748_v37  ;;  %v1753_v55 = vsub.s32 4294967266, %v1748_v37  ;;  %v1750_v63 = vshll.u32 %v1741_v61, %v1748_v37  ;;  %vm1776_vm9 = vcmp.eq.s32.totalorder %v1771_v31, 2 }
 0x172   : > { %vm1773_vm11 = vcmp.eq.s32.totalorder %v1771_v31, 0  ;;  %vm1772_vm14 = vcmp.lt.s32.totalorder %v1771_v31, 2 }
 0x173   : > { %v1751_v62 = vshrl.u32 %v1733_v41, %v1749_v1  ;;  %v1754_v49 = vadd.s32 127, %v1753_v55 }
 0x175   : > { %v1752_v22 = vor.u32 %v1751_v62, %v1750_v63  ;;  %v1755_v20 = vshll.u32 %v1754_v49, 23 }
 0x176   : > { %v2136_v50 = vpop.eup %2135 }
 0x177   : > { %v2138_v53 = vpop.eup %2137  ;;  %v1555_v27 = vxor.u32 2147483648, %v2136_v50  ;;  %v1756_v26 = vor.u32 4788187, %v1755_v20  ;;  %v1759_v3 = vcvt.s32.f32 %v1752_v22 }
 0x178   : > { %v1552_v58 = vxor.u32 2147483648, %v2138_v53 }
 0x179   : > { %v1556_v52 = vsel %vm1554_vm0, %v1555_v27, %v2138_v53  ;;  %v1660_v23 = vsel %vm1658_vm2, %v1555_v27, %v2138_v53  ;;  %v1757_v48 = vand.u32 2147483647, %v1756_v26 }
 0x17a   : > { %v1553_v29 = vsel %vm1551_vm3, %v2136_v50, %v1552_v58  ;;  %v1657_v54 = vsel %vm1655_vm4, %v2136_v50, %v1552_v58 }
 0x17b   : > { %v1557_v35 = vsel %vm1550_vm5, %v1553_v29, %v1556_v52  ;;  %v1661_v38 = vsel %vm1654_vm12, %v1657_v54, %v1660_v23  ;;  %v1760_v21 = vmul.f32 %v1759_v3, %v1757_v48 }
 0x17c   : > { %v1558_v34 = vsel %vm1547_vm6, nan, %v1557_v35  ;;  %v1662_v19 = vsel %vm1547_vm6, nan, %v1661_v38 }
 0x17d   : > { %1559 = vst [vmem:[%s2615_s13 + $0x30] sm:$0xff] %v1558_v34  ;;  %1663 = vst [vmem:[%s2615_s13 + $0x70] sm:$0xff] %v1662_v19  ;;  %v1761_v40 = vxor.u32 2147483648, %v1760_v21 }
 0x17f   : > { %v1762_v51 = vsel %vm1679_vm7, %v1761_v40, %v1760_v21 }
 0x180   : > { %v1765_v56 = vsel %vm1678_vm8, %v2917_v32, %v1762_v51 }
 0x181   : > { %2139 = vcosq.f32 %v1765_v56 }
 0x182   : > { %2141 = vsinq.f32 %v1765_v56 }
 0x18b   : > { %v2140_v45 = vpop.eup %2139 }
 0x18c   : > { %v2142_v9 = vpop.eup %2141  ;;  %v1777_v16 = vxor.u32 2147483648, %v2140_v45 }
 0x18d   : > { %v1774_v44 = vxor.u32 2147483648, %v2142_v9 }
 0x18e   : > { %v1778_v0 = vsel %vm1776_vm9, %v1777_v16, %v2142_v9  ;;  %v1882_v46 = vsel %vm1880_vm10, %v1777_v16, %v2142_v9 }
 0x18f   : > { %v1775_v13 = vsel %vm1773_vm11, %v2140_v45, %v1774_v44  ;;  %v1879_v14 = vsel %vm1877_vm13, %v2140_v45, %v1774_v44 }
 0x190   : > { %v1779_v4 = vsel %vm1772_vm14, %v1775_v13, %v1778_v0  ;;  %v1883_v28 = vsel %vm1876_vm15, %v1879_v14, %v1882_v46 }
 0x191   : > { %v1780_v30 = vsel %vm1769_vm1, nan, %v1779_v4  ;;  %v1884_v24 = vsel %vm1769_vm1, nan, %v1883_v28 }
 0x192   : > { %1781 = vst [vmem:[%s2615_s13 + $0x38] sm:$0xff] %v1780_v30  ;;  %1885 = vst [vmem:[%s2615_s13 + $0x78] sm:$0xff] %v1884_v24 }
 0x193   : > { %2156 = shalt.err (!%p2153_p2)
}
 0x194   : > { %s2157_s26 = scalar_lea.hbm %s3098_s20, 2048  ;;  %s2161_s29 = scalar_lea.hbm %s3149_s1, 4096 }
 0x195   : > { %p2158_p3 = scmp.ne.s32.totalorder %s3098_s20, %s2157_s26  ;;  %p2162_p8 = scmp.lt.u32.totalorder %s3098_s20, %s3149_s1 }
 0x196   : > { %p2163_p9 = scmp.lt.u32.totalorder %s2161_s29, %s2157_s26  ;;  %p2165_p11 = scmp.lt.u32.totalorder %s2157_s26, %s3098_s20 }
 0x197   : > { %p2159_p4 = pnand %p2158_p3, %p2266_p5 }
 0x198   : > { %p2164_p10 = por %p2163_p9, %p2162_p8 }
 0x199   : > { %p2160_p7 = pneg %p2159_p4 }
 0x19a   : > { %p2166_p12 = por %p2165_p11, %p2164_p10 }
 0x19c   : > { %p2167_p13 = pnand %p2166_p12, %p2160_p7 }
 0x19e   : > { %2170 = shalt.err (!%p2167_p13)
}
 0x19f   : > { %s2216_s3 = smov 128   ;;  %s2217_s4 = smov 256  }
 0x1a0   : > { %s2218_s5 = smov 8  }
 0x1a1   : > { %2056 = dma.vmem_to_hbm [thread:$0]  (%p2266_p5), %s3100_s14, 2048, %s3098_s20, %s3107_s21, %s2216_s3, %s2217_s4, %s2218_s5  }
 0x1a2 PF: > { %p2062_p0 = scmp.ge.s32.totalorder %s2205_s9, 2  ;;  %s1914_s10 = sand.u32 1, %s2193_s6  }
 0x1a3   : > { %s1915_s11 = scalar_lea.sflag [#allocation3], %s1914_s10 }
 0x1a4   : > { %p2059_p1 = pnand %p2062_p0, %p2270_p6 }
 0x1a6   : > { %2188 = dma.done.wait (!%p2059_p1), %s1915_s11, 2048  }
 0x1a7   : > { %2190 = vsyncadd (!%p2059_p1), %s1915_s11, 4294965248  ;;  %p11_p2 = scmp.ge.s32.totalorder %s2252_s12, 4   ;;  %s3164_s6 = smov %s2197_s7 }
 0x1a8   : > { %s3165_s7 = smov %s2201_s8  ;;  %s3166_s8 = smov %s2264_s15 }
 0x1a9   : > { %s3167_s9 = smov %s2252_s12  ;;  %13 = sbr.rel (!%p11_p2) target bundleno = 3 (0x3), region = 56 }
 0x1b0   :  { %1920 = vsyncpa [#allocation3], 1 }
 0x1b1   :  { %1922 = vsyncpa [#allocation3 + $0x1], 1 }

</bundles_post_ra>
